<compile_context>
chip_gen: v7x
topology: tpu7x:2x2x1
jax: 0.10.0
libtpu: 0.0.40
codegen_flags: <defaults>
</compile_context>

<pallas_src>
import jax
import jax.numpy as jnp
from jax import lax
from jax.experimental import pallas as pl
from jax.experimental.pallas import tpu as pltpu


# --------------------------------------------------------------------------
# Scalar bin-boundary table (the tiny scalar part of torchvision roi_pool)
# --------------------------------------------------------------------------
def _round_half_away_from_zero(x):
    # matches C round() used by torchvision for the roi corner quantization
    return jnp.sign(x) * jnp.floor(jnp.abs(x) + 0.5)


def _roi_bounds_table(tensor_boxes, spatial_scale, s, h, w):
    """Separable int32 bounds, per image, flat:

    per box (4*s entries): [hs_0..hs_{s-1}, he_0.., ws_0.., we_0..],
    boxes concatenated box-major -> shape (batch, n_boxes * 4 * s).
    (hs/he depend only on ph, ws/we only on pw -> enables separable pooling.)
    """
    batch, n_boxes, _ = tensor_boxes.shape
    b = tensor_boxes.astype(jnp.float32)                      # (x1, y1, x2, y2)
    rs_w = _round_half_away_from_zero(b[..., 0] * spatial_scale)
    rs_h = _round_half_away_from_zero(b[..., 1] * spatial_scale)
    re_w = _round_half_away_from_zero(b[..., 2] * spatial_scale)
    re_h = _round_half_away_from_zero(b[..., 3] * spatial_scale)
    roi_w = jnp.maximum(re_w - rs_w + 1.0, 1.0)
    roi_h = jnp.maximum(re_h - rs_h + 1.0, 1.0)
    bin_w = roi_w / s
    bin_h = roi_h / s
    hs = jnp.stack([jnp.clip(jnp.floor(ph * bin_h) + rs_h, 0, h) for ph in range(s)], -1)
    he = jnp.stack([jnp.clip(jnp.ceil((ph + 1) * bin_h) + rs_h, 0, h) for ph in range(s)], -1)
    ws = jnp.stack([jnp.clip(jnp.floor(pw * bin_w) + rs_w, 0, w) for pw in range(s)], -1)
    we = jnp.stack([jnp.clip(jnp.ceil((pw + 1) * bin_w) + rs_w, 0, w) for pw in range(s)], -1)
    tbl = jnp.concatenate([hs, he, ws, we], axis=-1)           # (batch, n_boxes, 4*s)
    # clip(0, h/w) guarantees non-negative values -> int32 truncation == floor
    return tbl.reshape(batch, n_boxes * 4 * s).astype(jnp.int32)


# --------------------------------------------------------------------------
# RoI max-pool kernel: grid = (image, H-tile); running max in VMEM scratch
# --------------------------------------------------------------------------
def _make_roi_kernel(n_boxes, s, tile_h, w, d, lenq, out_dtype):
    def kernel(tbl_ref, feat_ref, out_ref, acc_ref):
        b = pl.program_id(0)
        t = pl.program_id(1)
        nt = pl.num_programs(1)
        neg32 = jnp.array(-jnp.inf, jnp.float32)

        @pl.when(t == 0)
        def _init():
            acc_ref[...] = jnp.full(acc_ref.shape, -jnp.inf, acc_ref.dtype)

        feat = feat_ref[...]                                   # (tile_h, w, d)
        fneg = jnp.array(-jnp.inf, feat.dtype)                 # scalar fill, no splat
        # lane-replicated index maps, hoisted (loop-invariant per grid step)
        col_idx = lax.broadcasted_iota(jnp.int32, (tile_h, w, d), 1)
        row_idx = lax.broadcasted_iota(jnp.int32, (tile_h, d), 0) + t * tile_h

        for box in range(n_boxes):                             # static unroll (small)
            off = box * 4 * s
            # --- separable step 1: column-masked max over W, once per pw ---
            colmax = []
            for pw in range(s):
                ws_ = tbl_ref[b, off + 2 * s + pw]
                we_ = tbl_ref[b, off + 3 * s + pw]
                cmask = (col_idx >= ws_) & (col_idx < we_)
                colmax.append(jnp.max(jnp.where(cmask, feat, fneg), axis=1))  # (tile_h, d)
            # --- separable step 2: each bin only reduces a (tile_h, d) slice ---
            for ph in range(s):
                hs_ = tbl_ref[b, off + ph]
                he_ = tbl_ref[b, off + s + ph]
                rmask = (row_idx >= hs_) & (row_idx < he_)                    # (tile_h, d)
                for pw in range(s):
                    k = box * s * s + ph * s + pw              # row order: box, ph, pw
                    mx = jnp.max(jnp.where(rmask, colmax[pw], fneg),
                                 axis=0, keepdims=True).astype(acc_ref.dtype)  # (1, d)
                    acc_ref[pl.ds(k, 1), :] = jnp.maximum(acc_ref[pl.ds(k, 1), :], mx)

        @pl.when(t == nt - 1)
        def _finalize():
            # torchvision: empty bins output 0.  An empty bin is exactly one whose
            # accumulator was never updated (still -inf): a non-empty bin always
            # intersects the clipped [0,h)x[0,w) region on some H-tile.
            res = acc_ref[0:lenq, :]
            out_ref[...] = jnp.where(res == neg32,
                                     jnp.zeros_like(res), res).astype(out_dtype)

    return kernel


def roi_pool_pallas(feat_nhwc, tbl, n_boxes, s, *, tile_h=None):
    batch, h, w, d = feat_nhwc.shape
    lenq = n_boxes * s * s
    lenq_pad = ((lenq + 7) // 8) * 8
    itemsize = feat_nhwc.dtype.itemsize
    if tile_h is None:
        # Largest tile height that keeps the (double-buffered) feature block
        # comfortably inside every generation's default scoped VMEM
        # (v5e: 16 MiB; v6e/v7x: 32 MiB).  On v6e, raise this budget together
        # with CompilerParams(vmem_limit_bytes=...) for bigger tiles.
        budget = 6 * 1024 * 1024
        rows = max(8, budget // max(1, w * d * itemsize))
        tile_h = min(h, rows)
    n_tiles = pl.cdiv(h, tile_h)

    kernel = _make_roi_kernel(n_boxes, s, tile_h, w, d, lenq, feat_nhwc.dtype)
    grid_spec = pltpu.PrefetchScalarGridSpec(
        num_scalar_prefetch=1,
        grid=(batch, n_tiles),
        in_specs=[pl.BlockSpec((None, tile_h, w, d),
                               lambda b, t, tbl_ref: (b, t, 0, 0))],
        out_specs=pl.BlockSpec((None, lenq, d),
                               lambda b, t, tbl_ref: (b, 0, 0)),
        scratch_shapes=[pltpu.VMEM((lenq_pad, d), jnp.float32)],
    )
    cost = pl.CostEstimate(
        flops=batch * n_boxes * (3 * s * h * w * d + 3 * s * s * h * d),
        transcendentals=0,
        bytes_accessed=(feat_nhwc.size + batch * lenq * d) * itemsize + tbl.size * 4,
    )
    return pl.pallas_call(
        kernel,
        out_shape=jax.ShapeDtypeStruct((batch, lenq, d), feat_nhwc.dtype),
        grid_spec=grid_spec,
        compiler_params=pltpu.CompilerParams(
            dimension_semantics=("parallel", "arbitrary")),    # images ∥, H-tiles carry max
        cost_estimate=cost,
    )(tbl, feat_nhwc)


# --------------------------------------------------------------------------
# GenshinOPE.forward
# --------------------------------------------------------------------------
def ope_forward(feature, boxes, spatial_scale, *, d, s, n_boxes, iterations,
                tile_h=None):
    """feature: (B, d, H, W) NCHW; boxes: list of (n_boxes, 4) (x1, y1, x2, y2)."""
    del iterations  # stored by the module but unused in its forward
    batch, dch, h, w = feature.shape
    assert dch == d
    assert boxes[0].shape[0] == n_boxes
    feat_nhwc = jnp.transpose(feature, (0, 2, 3, 1))           # channels-last
    tensor_boxes = jnp.stack(boxes, axis=0)                    # (B, n_boxes, 4)
    tbl = _roi_bounds_table(tensor_boxes, spatial_scale, s, h, w)
    Qa = roi_pool_pallas(feat_nhwc, tbl, n_boxes, s, tile_h=tile_h)
    return [Qa]                                                # (B, n_boxes*s*s, d)


# --------------------------------------------------------------------------
# Pure-JAX reference (same torchvision semantics) for a correctness check
# --------------------------------------------------------------------------
def _roi_pool_reference(feat_nhwc, tbl, n_boxes, s):
    batch, h, w, d = feat_nhwc.shape
    tbl_host = jax.device_get(tbl)
    imgs = []
    for b in range(batch):
        rows = []
        for box in range(n_boxes):
            off = box * 4 * s
            hs = tbl_host[b, off:off + s]
            he = tbl_host[b, off + s:off + 2 * s]
            ws = tbl_host[b, off + 2 * s:off + 3 * s]
            we = tbl_host[b, off + 3 * s:off + 4 * s]
            for ph in range(s):
                for pw in range(s):
                    if he[ph] <= hs[ph] or we[pw] <= ws[pw]:
                        rows.append(jnp.zeros((d,), feat_nhwc.dtype))
                    else:
                        rows.append(jnp.max(
                            feat_nhwc[b, hs[ph]:he[ph], ws[pw]:we[pw], :],
                            axis=(0, 1)))
        imgs.append(jnp.stack(rows, axis=0))
    return jnp.stack(imgs, axis=0)


# --------------------------------------------------------------------------
if __name__ == "__main__":
    d, s, iterations, n_boxes = 128, 2, 2, 3                   # d=128 -> lane-dense
    batch, h, w = 2, 16, 16
    spatial_scale = 0.25                                       # image coords are 64x64

    key = jax.random.PRNGKey(0)
    k_feat, k_box = jax.random.split(key, 2)

    feature = jax.random.normal(k_feat, (batch, d, h, w), jnp.float32)   # NCHW

    kx1, ky1, kw_, kh_ = jax.random.split(k_box, 4)
    x1 = jax.random.uniform(kx1, (batch, n_boxes), minval=0.0, maxval=48.0)
    y1 = jax.random.uniform(ky1, (batch, n_boxes), minval=0.0, maxval=48.0)
    bw = jax.random.uniform(kw_, (batch, n_boxes), minval=8.0, maxval=40.0)
    bh = jax.random.uniform(kh_, (batch, n_boxes), minval=8.0, maxval=40.0)
    tensor_boxes = jnp.stack([x1, y1, x1 + bw, y1 + bh], axis=-1)        # (x1,y1,x2,y2)
    # force one box mostly off-image so clipping + empty-bin paths are exercised
    tensor_boxes = tensor_boxes.at[0, 0].set(jnp.array([70.0, 70.0, 90.0, 90.0]))
    boxes = [tensor_boxes[i] for i in range(batch)]

    # tile_h=8 -> grid (batch, 2): exercises the H-tiled running-max path
    out_list = ope_forward(feature, boxes, spatial_scale,
                           d=d, s=s, n_boxes=n_boxes, iterations=iterations,
                           tile_h=8)
    out_list = [jax.block_until_ready(o) for o in out_list]

    assert len(out_list) == 1
    Qa = out_list[0]
    lenq = n_boxes * s * s
    assert Qa.shape == (batch, lenq, d)
    assert bool(jnp.all(jnp.isfinite(Qa)))

    # correctness check against a pure-JAX re-implementation of roi_pool
    feat_nhwc = jnp.transpose(feature, (0, 2, 3, 1))
    tbl = _roi_bounds_table(jnp.stack(boxes, axis=0), spatial_scale, s, h, w)
    ref = _roi_pool_reference(feat_nhwc, tbl, n_boxes, s)
    assert bool(jnp.allclose(Qa, ref, atol=1e-6, rtol=1e-6))

    # also check the single-tile (auto tile_h) path
    Qa2 = ope_forward(feature, boxes, spatial_scale,
                      d=d, s=s, n_boxes=n_boxes, iterations=iterations)[0]
    Qa2 = jax.block_until_ready(Qa2)
    assert bool(jnp.allclose(Qa2, ref, atol=1e-6, rtol=1e-6))

    print("KERNEL_OK")
</pallas_src>

<mosaic_0001>
module attributes {stable_mosaic.version = 11 : i64} {
  func.func @kernel(%arg0: i32, %arg1: i32, %arg2: memref<2x24xi32, #tpu.memory_space<smem>>, %arg3: memref<1x8x16x128xf32, #tpu.memory_space<vmem>>, %arg4: memref<1x12x128xf32, #tpu.memory_space<vmem>>, %arg5: memref<16x128xf32, #tpu.memory_space<vmem>>) attributes {dimension_semantics = [#tpu.dimension_semantics<parallel>, #tpu.dimension_semantics<arbitrary>], iteration_bounds = array<i64: 2, 2>, scalar_prefetch = 1 : i64, scratch_operands = 1 : i64, tpu.core_type = #tpu.core_type<tc>, window_params = [{transform_indices = @transform_0, window_bounds = array<i64: 1, 8, 16, 128>}, {transform_indices = @transform_1, window_bounds = array<i64: 1, 12, 128>}]} {
    %c0_i32 = arith.constant 0 : i32
    %0 = arith.cmpi eq, %arg1, %c0_i32 : i32
    %1 = arith.extui %0 : i1 to i32
    %c0_i32_0 = arith.constant 0 : i32
    %2 = arith.cmpi ne, %1, %c0_i32_0 : i32
    scf.if %2 {
      %cst_90 = arith.constant 0xFF800000 : f32
      %223 = vector.broadcast %cst_90 : f32 to vector<16x128xf32>
      %c0_91 = arith.constant 0 : index
      %c0_92 = arith.constant 0 : index
      %224 = vector.load %arg5[%c0_91, %c0_92] : memref<16x128xf32, #tpu.memory_space<vmem>>, vector<16x128xf32>
      tpu.vector_store %arg5[%c0_91, %c0_92], %223 {strides = array<i32>} : memref<16x128xf32, #tpu.memory_space<vmem>>, vector<16x128xf32>,
    } else {
    }
    %c0 = arith.constant 0 : index
    %c0_1 = arith.constant 0 : index
    %c0_2 = arith.constant 0 : index
    %c0_3 = arith.constant 0 : index
    %3 = vector.load %arg3[%c0, %c0_1, %c0_2, %c0_3] : memref<1x8x16x128xf32, #tpu.memory_space<vmem>>, vector<1x8x16x128xf32>
    %4 = vector.shape_cast %3 : vector<1x8x16x128xf32> to vector<8x16x128xf32>
    %5 = tpu.iota {dimensions = array<i32: 1>} : vector<8x16x128xi32>
    %6 = tpu.iota {dimensions = array<i32: 0>} : vector<8x128xi32>
    %c8_i32 = arith.constant 8 : i32
    %7 = arith.muli %arg1, %c8_i32 : i32
    %8 = vector.broadcast %7 : i32 to vector<8x128xi32>
    %9 = arith.addi %6, %8 : vector<8x128xi32>
    %10 = arith.index_cast %arg0 : i32 to index
    %c4 = arith.constant 4 : index
    %11 = memref.load %arg2[%10, %c4] : memref<2x24xi32, #tpu.memory_space<smem>>
    %12 = arith.index_cast %arg0 : i32 to index
    %c6 = arith.constant 6 : index
    %13 = memref.load %arg2[%12, %c6] : memref<2x24xi32, #tpu.memory_space<smem>>
    %14 = vector.broadcast %11 : i32 to vector<8x16x128xi32>
    %15 = arith.cmpi sge, %5, %14 : vector<8x16x128xi32>
    %16 = vector.broadcast %13 : i32 to vector<8x16x128xi32>
    %17 = arith.cmpi slt, %5, %16 : vector<8x16x128xi32>
    %18 = arith.andi %15, %17 : vector<8x16x128xi1>
    %cst = arith.constant 0xFF800000 : f32
    %19 = vector.broadcast %cst : f32 to vector<8x16x128xf32>
    %20 = arith.select %18, %4, %19 : vector<8x16x128xi1>, vector<8x16x128xf32>
    %cst_4 = arith.constant dense<0xFF800000> : vector<8x128xf32>
    %21 = vector.multi_reduction <maximumf>, %20, %cst_4 [1] : vector<8x16x128xf32> to vector<8x128xf32>
    %22 = arith.index_cast %arg0 : i32 to index
    %c5 = arith.constant 5 : index
    %23 = memref.load %arg2[%22, %c5] : memref<2x24xi32, #tpu.memory_space<smem>>
    %24 = arith.index_cast %arg0 : i32 to index
    %c7 = arith.constant 7 : index
    %25 = memref.load %arg2[%24, %c7] : memref<2x24xi32, #tpu.memory_space<smem>>
    %26 = vector.broadcast %23 : i32 to vector<8x16x128xi32>
    %27 = arith.cmpi sge, %5, %26 : vector<8x16x128xi32>
    %28 = vector.broadcast %25 : i32 to vector<8x16x128xi32>
    %29 = arith.cmpi slt, %5, %28 : vector<8x16x128xi32>
    %30 = arith.andi %27, %29 : vector<8x16x128xi1>
    %cst_5 = arith.constant 0xFF800000 : f32
    %31 = vector.broadcast %cst_5 : f32 to vector<8x16x128xf32>
    %32 = arith.select %30, %4, %31 : vector<8x16x128xi1>, vector<8x16x128xf32>
    %cst_6 = arith.constant dense<0xFF800000> : vector<8x128xf32>
    %33 = vector.multi_reduction <maximumf>, %32, %cst_6 [1] : vector<8x16x128xf32> to vector<8x128xf32>
    %34 = arith.index_cast %arg0 : i32 to index
    %c0_7 = arith.constant 0 : index
    %35 = memref.load %arg2[%34, %c0_7] : memref<2x24xi32, #tpu.memory_space<smem>>
    %36 = arith.index_cast %arg0 : i32 to index
    %c2 = arith.constant 2 : index
    %37 = memref.load %arg2[%36, %c2] : memref<2x24xi32, #tpu.memory_space<smem>>
    %38 = vector.broadcast %35 : i32 to vector<8x128xi32>
    %39 = arith.cmpi sge, %9, %38 : vector<8x128xi32>
    %40 = vector.broadcast %37 : i32 to vector<8x128xi32>
    %41 = arith.cmpi slt, %9, %40 : vector<8x128xi32>
    %42 = arith.andi %39, %41 : vector<8x128xi1>
    %cst_8 = arith.constant 0xFF800000 : f32
    %43 = vector.broadcast %cst_8 : f32 to vector<8x128xf32>
    %44 = arith.select %42, %21, %43 : vector<8x128xi1>, vector<8x128xf32>
    %cst_9 = arith.constant dense<0xFF800000> : vector<128xf32>
    %45 = vector.multi_reduction <maximumf>, %44, %cst_9 [0] : vector<8x128xf32> to vector<128xf32>
    %46 = vector.shape_cast %45 : vector<128xf32> to vector<1x128xf32>
    %c0_10 = arith.constant 0 : index
    %c0_11 = arith.constant 0 : index
    %47 = vector.load %arg5[%c0_10, %c0_11] : memref<16x128xf32, #tpu.memory_space<vmem>>, vector<1x128xf32>
    %48 = arith.maximumf %47, %46 : vector<1x128xf32>
    %c0_12 = arith.constant 0 : index
    %c0_13 = arith.constant 0 : index
    %49 = vector.load %arg5[%c0_12, %c0_13] : memref<16x128xf32, #tpu.memory_space<vmem>>, vector<1x128xf32>
    tpu.vector_store %arg5[%c0_12, %c0_13], %48 {strides = array<i32>} : memref<16x128xf32, #tpu.memory_space<vmem>>, vector<1x128xf32>,
    %cst_14 = arith.constant 0xFF800000 : f32
    %50 = vector.broadcast %cst_14 : f32 to vector<8x128xf32>
    %51 = arith.select %42, %33, %50 : vector<8x128xi1>, vector<8x128xf32>
    %cst_15 = arith.constant dense<0xFF800000> : vector<128xf32>
    %52 = vector.multi_reduction <maximumf>, %51, %cst_15 [0] : vector<8x128xf32> to vector<128xf32>
    %53 = vector.shape_cast %52 : vector<128xf32> to vector<1x128xf32>
    %c1 = arith.constant 1 : index
    %c0_16 = arith.constant 0 : index
    %54 = vector.load %arg5[%c1, %c0_16] : memref<16x128xf32, #tpu.memory_space<vmem>>, vector<1x128xf32>
    %55 = arith.maximumf %54, %53 : vector<1x128xf32>
    %c1_17 = arith.constant 1 : index
    %c0_18 = arith.constant 0 : index
    %56 = vector.load %arg5[%c1_17, %c0_18] : memref<16x128xf32, #tpu.memory_space<vmem>>, vector<1x128xf32>
    tpu.vector_store %arg5[%c1_17, %c0_18], %55 {strides = array<i32>} : memref<16x128xf32, #tpu.memory_space<vmem>>, vector<1x128xf32>,
    %57 = arith.index_cast %arg0 : i32 to index
    %c1_19 = arith.constant 1 : index
    %58 = memref.load %arg2[%57, %c1_19] : memref<2x24xi32, #tpu.memory_space<smem>>
    %59 = arith.index_cast %arg0 : i32 to index
    %c3 = arith.constant 3 : index
    %60 = memref.load %arg2[%59, %c3] : memref<2x24xi32, #tpu.memory_space<smem>>
    %61 = vector.broadcast %58 : i32 to vector<8x128xi32>
    %62 = arith.cmpi sge, %9, %61 : vector<8x128xi32>
    %63 = vector.broadcast %60 : i32 to vector<8x128xi32>
    %64 = arith.cmpi slt, %9, %63 : vector<8x128xi32>
    %65 = arith.andi %62, %64 : vector<8x128xi1>
    %cst_20 = arith.constant 0xFF800000 : f32
    %66 = vector.broadcast %cst_20 : f32 to vector<8x128xf32>
    %67 = arith.select %65, %21, %66 : vector<8x128xi1>, vector<8x128xf32>
    %cst_21 = arith.constant dense<0xFF800000> : vector<128xf32>
    %68 = vector.multi_reduction <maximumf>, %67, %cst_21 [0] : vector<8x128xf32> to vector<128xf32>
    %69 = vector.shape_cast %68 : vector<128xf32> to vector<1x128xf32>
    %c2_22 = arith.constant 2 : index
    %c0_23 = arith.constant 0 : index
    %70 = vector.load %arg5[%c2_22, %c0_23] : memref<16x128xf32, #tpu.memory_space<vmem>>, vector<1x128xf32>
    %71 = arith.maximumf %70, %69 : vector<1x128xf32>
    %c2_24 = arith.constant 2 : index
    %c0_25 = arith.constant 0 : index
    %72 = vector.load %arg5[%c2_24, %c0_25] : memref<16x128xf32, #tpu.memory_space<vmem>>, vector<1x128xf32>
    tpu.vector_store %arg5[%c2_24, %c0_25], %71 {strides = array<i32>} : memref<16x128xf32, #tpu.memory_space<vmem>>, vector<1x128xf32>,
    %cst_26 = arith.constant 0xFF800000 : f32
    %73 = vector.broadcast %cst_26 : f32 to vector<8x128xf32>
    %74 = arith.select %65, %33, %73 : vector<8x128xi1>, vector<8x128xf32>
    %cst_27 = arith.constant dense<0xFF800000> : vector<128xf32>
    %75 = vector.multi_reduction <maximumf>, %74, %cst_27 [0] : vector<8x128xf32> to vector<128xf32>
    %76 = vector.shape_cast %75 : vector<128xf32> to vector<1x128xf32>
    %c3_28 = arith.constant 3 : index
    %c0_29 = arith.constant 0 : index
    %77 = vector.load %arg5[%c3_28, %c0_29] : memref<16x128xf32, #tpu.memory_space<vmem>>, vector<1x128xf32>
    %78 = arith.maximumf %77, %76 : vector<1x128xf32>
    %c3_30 = arith.constant 3 : index
    %c0_31 = arith.constant 0 : index
    %79 = vector.load %arg5[%c3_30, %c0_31] : memref<16x128xf32, #tpu.memory_space<vmem>>, vector<1x128xf32>
    tpu.vector_store %arg5[%c3_30, %c0_31], %78 {strides = array<i32>} : memref<16x128xf32, #tpu.memory_space<vmem>>, vector<1x128xf32>,
    %80 = arith.index_cast %arg0 : i32 to index
    %c12 = arith.constant 12 : index
    %81 = memref.load %arg2[%80, %c12] : memref<2x24xi32, #tpu.memory_space<smem>>
    %82 = arith.index_cast %arg0 : i32 to index
    %c14 = arith.constant 14 : index
    %83 = memref.load %arg2[%82, %c14] : memref<2x24xi32, #tpu.memory_space<smem>>
    %84 = vector.broadcast %81 : i32 to vector<8x16x128xi32>
    %85 = arith.cmpi sge, %5, %84 : vector<8x16x128xi32>
    %86 = vector.broadcast %83 : i32 to vector<8x16x128xi32>
    %87 = arith.cmpi slt, %5, %86 : vector<8x16x128xi32>
    %88 = arith.andi %85, %87 : vector<8x16x128xi1>
    %cst_32 = arith.constant 0xFF800000 : f32
    %89 = vector.broadcast %cst_32 : f32 to vector<8x16x128xf32>
    %90 = arith.select %88, %4, %89 : vector<8x16x128xi1>, vector<8x16x128xf32>
    %cst_33 = arith.constant dense<0xFF800000> : vector<8x128xf32>
    %91 = vector.multi_reduction <maximumf>, %90, %cst_33 [1] : vector<8x16x128xf32> to vector<8x128xf32>
    %92 = arith.index_cast %arg0 : i32 to index
    %c13 = arith.constant 13 : index
    %93 = memref.load %arg2[%92, %c13] : memref<2x24xi32, #tpu.memory_space<smem>>
    %94 = arith.index_cast %arg0 : i32 to index
    %c15 = arith.constant 15 : index
    %95 = memref.load %arg2[%94, %c15] : memref<2x24xi32, #tpu.memory_space<smem>>
    %96 = vector.broadcast %93 : i32 to vector<8x16x128xi32>
    %97 = arith.cmpi sge, %5, %96 : vector<8x16x128xi32>
    %98 = vector.broadcast %95 : i32 to vector<8x16x128xi32>
    %99 = arith.cmpi slt, %5, %98 : vector<8x16x128xi32>
    %100 = arith.andi %97, %99 : vector<8x16x128xi1>
    %cst_34 = arith.constant 0xFF800000 : f32
    %101 = vector.broadcast %cst_34 : f32 to vector<8x16x128xf32>
    %102 = arith.select %100, %4, %101 : vector<8x16x128xi1>, vector<8x16x128xf32>
    %cst_35 = arith.constant dense<0xFF800000> : vector<8x128xf32>
    %103 = vector.multi_reduction <maximumf>, %102, %cst_35 [1] : vector<8x16x128xf32> to vector<8x128xf32>
    %104 = arith.index_cast %arg0 : i32 to index
    %c8 = arith.constant 8 : index
    %105 = memref.load %arg2[%104, %c8] : memref<2x24xi32, #tpu.memory_space<smem>>
    %106 = arith.index_cast %arg0 : i32 to index
    %c10 = arith.constant 10 : index
    %107 = memref.load %arg2[%106, %c10] : memref<2x24xi32, #tpu.memory_space<smem>>
    %108 = vector.broadcast %105 : i32 to vector<8x128xi32>
    %109 = arith.cmpi sge, %9, %108 : vector<8x128xi32>
    %110 = vector.broadcast %107 : i32 to vector<8x128xi32>
    %111 = arith.cmpi slt, %9, %110 : vector<8x128xi32>
    %112 = arith.andi %109, %111 : vector<8x128xi1>
    %cst_36 = arith.constant 0xFF800000 : f32
    %113 = vector.broadcast %cst_36 : f32 to vector<8x128xf32>
    %114 = arith.select %112, %91, %113 : vector<8x128xi1>, vector<8x128xf32>
    %cst_37 = arith.constant dense<0xFF800000> : vector<128xf32>
    %115 = vector.multi_reduction <maximumf>, %114, %cst_37 [0] : vector<8x128xf32> to vector<128xf32>
    %116 = vector.shape_cast %115 : vector<128xf32> to vector<1x128xf32>
    %c4_38 = arith.constant 4 : index
    %c0_39 = arith.constant 0 : index
    %117 = vector.load %arg5[%c4_38, %c0_39] : memref<16x128xf32, #tpu.memory_space<vmem>>, vector<1x128xf32>
    %118 = arith.maximumf %117, %116 : vector<1x128xf32>
    %c4_40 = arith.constant 4 : index
    %c0_41 = arith.constant 0 : index
    %119 = vector.load %arg5[%c4_40, %c0_41] : memref<16x128xf32, #tpu.memory_space<vmem>>, vector<1x128xf32>
    tpu.vector_store %arg5[%c4_40, %c0_41], %118 {strides = array<i32>} : memref<16x128xf32, #tpu.memory_space<vmem>>, vector<1x128xf32>,
    %cst_42 = arith.constant 0xFF800000 : f32
    %120 = vector.broadcast %cst_42 : f32 to vector<8x128xf32>
    %121 = arith.select %112, %103, %120 : vector<8x128xi1>, vector<8x128xf32>
    %cst_43 = arith.constant dense<0xFF800000> : vector<128xf32>
    %122 = vector.multi_reduction <maximumf>, %121, %cst_43 [0] : vector<8x128xf32> to vector<128xf32>
    %123 = vector.shape_cast %122 : vector<128xf32> to vector<1x128xf32>
    %c5_44 = arith.constant 5 : index
    %c0_45 = arith.constant 0 : index
    %124 = vector.load %arg5[%c5_44, %c0_45] : memref<16x128xf32, #tpu.memory_space<vmem>>, vector<1x128xf32>
    %125 = arith.maximumf %124, %123 : vector<1x128xf32>
    %c5_46 = arith.constant 5 : index
    %c0_47 = arith.constant 0 : index
    %126 = vector.load %arg5[%c5_46, %c0_47] : memref<16x128xf32, #tpu.memory_space<vmem>>, vector<1x128xf32>
    tpu.vector_store %arg5[%c5_46, %c0_47], %125 {strides = array<i32>} : memref<16x128xf32, #tpu.memory_space<vmem>>, vector<1x128xf32>,
    %127 = arith.index_cast %arg0 : i32 to index
    %c9 = arith.constant 9 : index
    %128 = memref.load %arg2[%127, %c9] : memref<2x24xi32, #tpu.memory_space<smem>>
    %129 = arith.index_cast %arg0 : i32 to index
    %c11 = arith.constant 11 : index
    %130 = memref.load %arg2[%129, %c11] : memref<2x24xi32, #tpu.memory_space<smem>>
    %131 = vector.broadcast %128 : i32 to vector<8x128xi32>
    %132 = arith.cmpi sge, %9, %131 : vector<8x128xi32>
    %133 = vector.broadcast %130 : i32 to vector<8x128xi32>
    %134 = arith.cmpi slt, %9, %133 : vector<8x128xi32>
    %135 = arith.andi %132, %134 : vector<8x128xi1>
    %cst_48 = arith.constant 0xFF800000 : f32
    %136 = vector.broadcast %cst_48 : f32 to vector<8x128xf32>
    %137 = arith.select %135, %91, %136 : vector<8x128xi1>, vector<8x128xf32>
    %cst_49 = arith.constant dense<0xFF800000> : vector<128xf32>
    %138 = vector.multi_reduction <maximumf>, %137, %cst_49 [0] : vector<8x128xf32> to vector<128xf32>
    %139 = vector.shape_cast %138 : vector<128xf32> to vector<1x128xf32>
    %c6_50 = arith.constant 6 : index
    %c0_51 = arith.constant 0 : index
    %140 = vector.load %arg5[%c6_50, %c0_51] : memref<16x128xf32, #tpu.memory_space<vmem>>, vector<1x128xf32>
    %141 = arith.maximumf %140, %139 : vector<1x128xf32>
    %c6_52 = arith.constant 6 : index
    %c0_53 = arith.constant 0 : index
    %142 = vector.load %arg5[%c6_52, %c0_53] : memref<16x128xf32, #tpu.memory_space<vmem>>, vector<1x128xf32>
    tpu.vector_store %arg5[%c6_52, %c0_53], %141 {strides = array<i32>} : memref<16x128xf32, #tpu.memory_space<vmem>>, vector<1x128xf32>,
    %cst_54 = arith.constant 0xFF800000 : f32
    %143 = vector.broadcast %cst_54 : f32 to vector<8x128xf32>
    %144 = arith.select %135, %103, %143 : vector<8x128xi1>, vector<8x128xf32>
    %cst_55 = arith.constant dense<0xFF800000> : vector<128xf32>
    %145 = vector.multi_reduction <maximumf>, %144, %cst_55 [0] : vector<8x128xf32> to vector<128xf32>
    %146 = vector.shape_cast %145 : vector<128xf32> to vector<1x128xf32>
    %c7_56 = arith.constant 7 : index
    %c0_57 = arith.constant 0 : index
    %147 = vector.load %arg5[%c7_56, %c0_57] : memref<16x128xf32, #tpu.memory_space<vmem>>, vector<1x128xf32>
    %148 = arith.maximumf %147, %146 : vector<1x128xf32>
    %c7_58 = arith.constant 7 : index
    %c0_59 = arith.constant 0 : index
    %149 = vector.load %arg5[%c7_58, %c0_59] : memref<16x128xf32, #tpu.memory_space<vmem>>, vector<1x128xf32>
    tpu.vector_store %arg5[%c7_58, %c0_59], %148 {strides = array<i32>} : memref<16x128xf32, #tpu.memory_space<vmem>>, vector<1x128xf32>,
    %150 = arith.index_cast %arg0 : i32 to index
    %c20 = arith.constant 20 : index
    %151 = memref.load %arg2[%150, %c20] : memref<2x24xi32, #tpu.memory_space<smem>>
    %152 = arith.index_cast %arg0 : i32 to index
    %c22 = arith.constant 22 : index
    %153 = memref.load %arg2[%152, %c22] : memref<2x24xi32, #tpu.memory_space<smem>>
    %154 = vector.broadcast %151 : i32 to vector<8x16x128xi32>
    %155 = arith.cmpi sge, %5, %154 : vector<8x16x128xi32>
    %156 = vector.broadcast %153 : i32 to vector<8x16x128xi32>
    %157 = arith.cmpi slt, %5, %156 : vector<8x16x128xi32>
    %158 = arith.andi %155, %157 : vector<8x16x128xi1>
    %cst_60 = arith.constant 0xFF800000 : f32
    %159 = vector.broadcast %cst_60 : f32 to vector<8x16x128xf32>
    %160 = arith.select %158, %4, %159 : vector<8x16x128xi1>, vector<8x16x128xf32>
    %cst_61 = arith.constant dense<0xFF800000> : vector<8x128xf32>
    %161 = vector.multi_reduction <maximumf>, %160, %cst_61 [1] : vector<8x16x128xf32> to vector<8x128xf32>
    %162 = arith.index_cast %arg0 : i32 to index
    %c21 = arith.constant 21 : index
    %163 = memref.load %arg2[%162, %c21] : memref<2x24xi32, #tpu.memory_space<smem>>
    %164 = arith.index_cast %arg0 : i32 to index
    %c23 = arith.constant 23 : index
    %165 = memref.load %arg2[%164, %c23] : memref<2x24xi32, #tpu.memory_space<smem>>
    %166 = vector.broadcast %163 : i32 to vector<8x16x128xi32>
    %167 = arith.cmpi sge, %5, %166 : vector<8x16x128xi32>
    %168 = vector.broadcast %165 : i32 to vector<8x16x128xi32>
    %169 = arith.cmpi slt, %5, %168 : vector<8x16x128xi32>
    %170 = arith.andi %167, %169 : vector<8x16x128xi1>
    %cst_62 = arith.constant 0xFF800000 : f32
    %171 = vector.broadcast %cst_62 : f32 to vector<8x16x128xf32>
    %172 = arith.select %170, %4, %171 : vector<8x16x128xi1>, vector<8x16x128xf32>
    %cst_63 = arith.constant dense<0xFF800000> : vector<8x128xf32>
    %173 = vector.multi_reduction <maximumf>, %172, %cst_63 [1] : vector<8x16x128xf32> to vector<8x128xf32>
    %174 = arith.index_cast %arg0 : i32 to index
    %c16 = arith.constant 16 : index
    %175 = memref.load %arg2[%174, %c16] : memref<2x24xi32, #tpu.memory_space<smem>>
    %176 = arith.index_cast %arg0 : i32 to index
    %c18 = arith.constant 18 : index
    %177 = memref.load %arg2[%176, %c18] : memref<2x24xi32, #tpu.memory_space<smem>>
    %178 = vector.broadcast %175 : i32 to vector<8x128xi32>
    %179 = arith.cmpi sge, %9, %178 : vector<8x128xi32>
    %180 = vector.broadcast %177 : i32 to vector<8x128xi32>
    %181 = arith.cmpi slt, %9, %180 : vector<8x128xi32>
    %182 = arith.andi %179, %181 : vector<8x128xi1>
    %cst_64 = arith.constant 0xFF800000 : f32
    %183 = vector.broadcast %cst_64 : f32 to vector<8x128xf32>
    %184 = arith.select %182, %161, %183 : vector<8x128xi1>, vector<8x128xf32>
    %cst_65 = arith.constant dense<0xFF800000> : vector<128xf32>
    %185 = vector.multi_reduction <maximumf>, %184, %cst_65 [0] : vector<8x128xf32> to vector<128xf32>
    %186 = vector.shape_cast %185 : vector<128xf32> to vector<1x128xf32>
    %c8_66 = arith.constant 8 : index
    %c0_67 = arith.constant 0 : index
    %187 = vector.load %arg5[%c8_66, %c0_67] : memref<16x128xf32, #tpu.memory_space<vmem>>, vector<1x128xf32>
    %188 = arith.maximumf %187, %186 : vector<1x128xf32>
    %c8_68 = arith.constant 8 : index
    %c0_69 = arith.constant 0 : index
    %189 = vector.load %arg5[%c8_68, %c0_69] : memref<16x128xf32, #tpu.memory_space<vmem>>, vector<1x128xf32>
    tpu.vector_store %arg5[%c8_68, %c0_69], %188 {strides = array<i32>} : memref<16x128xf32, #tpu.memory_space<vmem>>, vector<1x128xf32>,
    %cst_70 = arith.constant 0xFF800000 : f32
    %190 = vector.broadcast %cst_70 : f32 to vector<8x128xf32>
    %191 = arith.select %182, %173, %190 : vector<8x128xi1>, vector<8x128xf32>
    %cst_71 = arith.constant dense<0xFF800000> : vector<128xf32>
    %192 = vector.multi_reduction <maximumf>, %191, %cst_71 [0] : vector<8x128xf32> to vector<128xf32>
    %193 = vector.shape_cast %192 : vector<128xf32> to vector<1x128xf32>
    %c9_72 = arith.constant 9 : index
    %c0_73 = arith.constant 0 : index
    %194 = vector.load %arg5[%c9_72, %c0_73] : memref<16x128xf32, #tpu.memory_space<vmem>>, vector<1x128xf32>
    %195 = arith.maximumf %194, %193 : vector<1x128xf32>
    %c9_74 = arith.constant 9 : index
    %c0_75 = arith.constant 0 : index
    %196 = vector.load %arg5[%c9_74, %c0_75] : memref<16x128xf32, #tpu.memory_space<vmem>>, vector<1x128xf32>
    tpu.vector_store %arg5[%c9_74, %c0_75], %195 {strides = array<i32>} : memref<16x128xf32, #tpu.memory_space<vmem>>, vector<1x128xf32>,
    %197 = arith.index_cast %arg0 : i32 to index
    %c17 = arith.constant 17 : index
    %198 = memref.load %arg2[%197, %c17] : memref<2x24xi32, #tpu.memory_space<smem>>
    %199 = arith.index_cast %arg0 : i32 to index
    %c19 = arith.constant 19 : index
    %200 = memref.load %arg2[%199, %c19] : memref<2x24xi32, #tpu.memory_space<smem>>
    %201 = vector.broadcast %198 : i32 to vector<8x128xi32>
    %202 = arith.cmpi sge, %9, %201 : vector<8x128xi32>
    %203 = vector.broadcast %200 : i32 to vector<8x128xi32>
    %204 = arith.cmpi slt, %9, %203 : vector<8x128xi32>
    %205 = arith.andi %202, %204 : vector<8x128xi1>
    %cst_76 = arith.constant 0xFF800000 : f32
    %206 = vector.broadcast %cst_76 : f32 to vector<8x128xf32>
    %207 = arith.select %205, %161, %206 : vector<8x128xi1>, vector<8x128xf32>
    %cst_77 = arith.constant dense<0xFF800000> : vector<128xf32>
    %208 = vector.multi_reduction <maximumf>, %207, %cst_77 [0] : vector<8x128xf32> to vector<128xf32>
    %209 = vector.shape_cast %208 : vector<128xf32> to vector<1x128xf32>
    %c10_78 = arith.constant 10 : index
    %c0_79 = arith.constant 0 : index
    %210 = vector.load %arg5[%c10_78, %c0_79] : memref<16x128xf32, #tpu.memory_space<vmem>>, vector<1x128xf32>
    %211 = arith.maximumf %210, %209 : vector<1x128xf32>
    %c10_80 = arith.constant 10 : index
    %c0_81 = arith.constant 0 : index
    %212 = vector.load %arg5[%c10_80, %c0_81] : memref<16x128xf32, #tpu.memory_space<vmem>>, vector<1x128xf32>
    tpu.vector_store %arg5[%c10_80, %c0_81], %211 {strides = array<i32>} : memref<16x128xf32, #tpu.memory_space<vmem>>, vector<1x128xf32>,
    %cst_82 = arith.constant 0xFF800000 : f32
    %213 = vector.broadcast %cst_82 : f32 to vector<8x128xf32>
    %214 = arith.select %205, %173, %213 : vector<8x128xi1>, vector<8x128xf32>
    %cst_83 = arith.constant dense<0xFF800000> : vector<128xf32>
    %215 = vector.multi_reduction <maximumf>, %214, %cst_83 [0] : vector<8x128xf32> to vector<128xf32>
    %216 = vector.shape_cast %215 : vector<128xf32> to vector<1x128xf32>
    %c11_84 = arith.constant 11 : index
    %c0_85 = arith.constant 0 : index
    %217 = vector.load %arg5[%c11_84, %c0_85] : memref<16x128xf32, #tpu.memory_space<vmem>>, vector<1x128xf32>
    %218 = arith.maximumf %217, %216 : vector<1x128xf32>
    %c11_86 = arith.constant 11 : index
    %c0_87 = arith.constant 0 : index
    %219 = vector.load %arg5[%c11_86, %c0_87] : memref<16x128xf32, #tpu.memory_space<vmem>>, vector<1x128xf32>
    tpu.vector_store %arg5[%c11_86, %c0_87], %218 {strides = array<i32>} : memref<16x128xf32, #tpu.memory_space<vmem>>, vector<1x128xf32>,
    %c1_i32 = arith.constant 1 : i32
    %220 = arith.cmpi eq, %arg1, %c1_i32 : i32
    %221 = arith.extui %220 : i1 to i32
    %cst_88 = arith.constant 0xFF800000 : f32
    %c0_i32_89 = arith.constant 0 : i32
    %222 = arith.cmpi ne, %221, %c0_i32_89 : i32
    scf.if %222 {
      %c0_90 = arith.constant 0 : index
      %c0_91 = arith.constant 0 : index
      %223 = vector.load %arg5[%c0_90, %c0_91] : memref<16x128xf32, #tpu.memory_space<vmem>>, vector<12x128xf32>
      %224 = vector.broadcast %cst_88 : f32 to vector<12x128xf32>
      %225 = arith.cmpf oeq, %223, %224 : vector<12x128xf32>
      %cst_92 = arith.constant 0.000000e+00 : f32
      %226 = vector.broadcast %cst_92 : f32 to vector<12x128xf32>
      %227 = arith.select %225, %226, %223 : vector<12x128xi1>, vector<12x128xf32>
      %c0_93 = arith.constant 0 : index
      %c0_94 = arith.constant 0 : index
      %c0_95 = arith.constant 0 : index
      %228 = vector.load %arg4[%c0_93, %c0_94, %c0_95] : memref<1x12x128xf32, #tpu.memory_space<vmem>>, vector<1x12x128xf32>
      %229 = vector.shape_cast %228 : vector<1x12x128xf32> to vector<12x128xf32>
      %230 = vector.shape_cast %227 : vector<12x128xf32> to vector<1x12x128xf32>
      tpu.vector_store %arg4[%c0_93, %c0_94, %c0_95], %230 {strides = array<i32>} : memref<1x12x128xf32, #tpu.memory_space<vmem>>, vector<1x12x128xf32>,
    } else {
    }
    return
  }
  func.func @transform_0(%arg0: i32, %arg1: i32, %arg2: memref<2x24xi32, #tpu.memory_space<smem>>) -> (i32, i32, i32, i32) {
    %c0_i32 = arith.constant 0 : i32
    %c0_i32_0 = arith.constant 0 : i32
    %c0_i32_1 = arith.constant 0 : i32
    return %arg0, %arg1, %c0_i32, %c0_i32_0 : i32, i32, i32, i32
  }
  func.func @transform_1(%arg0: i32, %arg1: i32, %arg2: memref<2x24xi32, #tpu.memory_space<smem>>) -> (i32, i32, i32) {
    %c0_i32 = arith.constant 0 : i32
    %c0_i32_0 = arith.constant 0 : i32
    %c0_i32_1 = arith.constant 0 : i32
    return %arg0, %c0_i32, %c0_i32_0 : i32, i32, i32
  }
}

</mosaic_0001>

<bundles_post_ra>
// kernel: tpu_custom_call.1
= control target key start
LH: loop header
LB: loop body
LE: loop exit
PB: predicated region body
PF: predicated region fallthrough
CT: control target
= control target key end

     0   :  { %s2259_s0 = inlined_call_operand.hbm [shape: s32[2,24], index: 0, kind: input, shape index: {}]   ;;  %s2260_s1 = inlined_call_operand.hbm [shape: f32[2,16,16,128], index: 1, kind: input, shape index: {}]   ;;  %s2261_s2 = inlined_call_operand.vmem [shape: f32[2,12,128], index: 2, kind: output, shape index: {}]  }
   0x1   :  { %s1174_s11 = scalar_lea.hbm %s2259_s0, 32 }
   0x2   :  { %p1175_p0 = scmp.ne.s32.totalorder %s2259_s0, %s1174_s11  ;;  %p1178_p1 = scmp.lt.u32.totalorder %s1174_s11, %s2259_s0 }
   0x4   :  { %p1180_p2 = pnand %p1178_p1, %p1175_p0 }
   0x6   :  { %1183 = shalt.err (!%p1180_p2)  }
   0x7   :  { %s1284_s16 = smov [#allocation4]  }
   0x8   :  { %8 = dma.hbm_to_smem %s2259_s0, 32, %s1284_s16, [#allocation3] }
   0x9   :  { %1246 = dma.done.wait [#allocation3], 32 }
   0xa   :  { %1247 = vsyncadd [#allocation3], 4294967264 }
   0xb   :  { %10 = sfence }
   0xc   :  { %11 = vsyncpa [#allocation6], 0 }
   0xd   :  { %13 = vsyncpa [#allocation6 + $0x1], 0  ;;  %s1316_s19 = smov 0   ;;  %s1318_s20 = smov 0  }
   0xe   :  { %s1320_s21 = smov 0   ;;  %s1322_s22 = smov 0  }
   0xf   :  { %s1324_s23 = smov 0   ;;  %s1326_s24 = smov 0  }
  0x10   :  { %s1328_s25 = smov 0   ;;  %s1330_s0 = smov 0  }
  0x11 LB: > { %s1062_s26 = sadd.s32 4294967295, %s1282_s0   ;;  %s28_s27 = sadd.s32 1, %s1274_s24  ;;  %s1282_s0 = sphi %s1330_s0, %s19_s0   ;;  %s1278_s25 = sphi %s1328_s25, %s2333_s25   ;;  %s1274_s24 = sphi %s1326_s24, %s2332_s24   ;;  %s1270_s23 = sphi %s1324_s23, %s2331_s23   ;;  %s1266_s22 = sphi %s1322_s22, %s2330_s22   ;;  %s1262_s21 = sphi %s1320_s21, %s2329_s21   ;;  %s1258_s20 = sphi %s1318_s20, %s2328_s20   ;;  %s1254_s19 = sphi %s1316_s19, %s2327_s19  }
  0x12   : > { %p29_p3 = scmp.ge.s32.totalorder %s28_s27, 2  ;;  %s31_s28 = sadd.s32 1, %s1278_s25 }
  0x13   : > { %s40_s29 = sadd.s32 1, %s1262_s21  ;;  %p47_p4 = scmp.ne.s32.totalorder %s1262_s21, %s1258_s20 }
  0x14   : > { %s2335_s27 = smov (%p29_p3, %s28_s27), 0  ;;  %s2337_s28 = smov (!%p29_p3, %s31_s28), %s1278_s25 }
  0x15   : > { %s36_s30 = ssub.s32 %s1274_s24, %s2335_s27  ;;  %p48_p5 = scmp.eq.s32.totalorder %s1282_s0, 0 }
  0x16   : > { %p33_p6 = scmp.ge.s32.totalorder %s2337_s28, 2  ;;  %p53_p7 = scmp.ne.s32.totalorder %s1258_s20, %s1254_s19 }
  0x17   : > { %p1367_p8 = por %p48_p5, %p47_p4  ;;  %p54_p9 = scmp.eq.s32.totalorder %s1062_s26, 0 }
  0x18   : > { %s2339_s28 = smov (%p33_p6, %s2337_s28), 0  ;;  %p1089_p11 = scmp.lt.s32.totalorder %s1282_s0, 4 }
  0x19   : > { %p1373_p10 = por %p54_p9, %p53_p7  ;;  %s35_s5 = ssub.s32 %s1278_s25, %s2339_s28 }
  0x1a   : > { %s37_s6 = sor.u32 %s36_s30, %s35_s5  ;;  %s103_s7 = sand.u32 1, %s1262_s21  }
  0x1b   : > { %p38_p12 = scmp.eq.s32.totalorder %s37_s6, 0  ;;  %s1066_s8 = sshll.u32 %s103_s7, 7 }
  0x1c   : > { %s1081_s9 = sshll.u32 %s1274_s24, 4  ;;  %s1069_s11 = sshll.u32 %s1278_s25, 5 }
  0x1d   : > { %s1383_s10 = scalar_select %p38_p12, %s1262_s21, %s40_s29  }
  0x1e   : > { %s114_s12 = sadd.s32 %s1081_s9, %s1069_s11  ;;  %s107_s13 = scalar_lea.vmem [#allocation5], %s1066_s8 }
  0x1f   : > { %s117_s14 = sshll.u32 %s107_s13, 4  ;;  %s1070_s15 = sshll.u32 %s114_s12, 7  ;;  %s1386_s14 = int_to_ptr.vmem [resolvable:$true] %s117_s14 }
  0x20   : > { %s1391_s18 = scalar_lea.hbm %s2260_s1, %s1070_s15  ;;  %p1397_p13 = pnand %p1089_p11, %p1367_p8 }
  0x21   : > { %s1402_s26 = scalar_lea.sflag [#allocation6], %s103_s7  ;;  %s1184_s29 = scalar_lea.hbm %s1391_s18, 2048 }
  0x22   : > { %p1185_p1 = scmp.ne.s32.totalorder %s1391_s18, %s1184_s29  ;;  %p1186_p2 = pneg %p1397_p13 }
  0x23   : > { %s1189_s5 = scalar_lea.hbm %s2260_s1, 8192  ;;  %p1190_p5 = scmp.lt.u32.totalorder %s1391_s18, %s2260_s1 }
  0x24   : > { %p1187_p3 = pnand %p1186_p2, %p1185_p1  ;;  %p1191_p6 = scmp.lt.u32.totalorder %s1189_s5, %s1184_s29 }
  0x25   : > { %p1193_p8 = scmp.lt.u32.totalorder %s1184_s29, %s1391_s18 }
  0x26   : > { %p1188_p4 = pneg %p1187_p3  ;;  %p1192_p7 = por %p1191_p6, %p1190_p5 }
  0x28   : > { %p1194_p9 = por %p1193_p8, %p1192_p7 }
  0x2a   : > { %p1195_p11 = pnand %p1194_p9, %p1188_p4 }
  0x2c   : > { %1198 = shalt.err (!%p1195_p11)
}
  0x2d   : > { %s1199_s7 = scalar_lea.vmem %s1386_s14, 2048  ;;  %s1285_s9 = smov [#allocation5]  }
  0x2e   : > { %p1200_p12 = scmp.ne.s32.totalorder %s1386_s14, %s1199_s7  ;;  %s1204_s11 = sshll.u32 %s1285_s9, 4  ;;  %s1205_s11 = int_to_ptr.vmem [resolvable:$false] %s1204_s11 }
  0x2f   : > { %s1206_s12 = scalar_lea.vmem %s1205_s11, 4096  ;;  %p1207_p0 = scmp.lt.s32.totalorder %s1386_s14, %s1205_s11 }
  0x30   : > { %p1202_p1 = pnand %p1200_p12, %p1186_p2  ;;  %p1208_p5 = scmp.lt.s32.totalorder %s1206_s12, %s1199_s7 }
  0x32   : > { %p1203_p3 = pneg %p1202_p1  ;;  %p1209_p6 = por %p1208_p5, %p1207_p0 }
  0x34   : > { %p1210_p7 = pnand %p1209_p6, %p1203_p3 }
  0x36   : > { %1213 = shalt.err (!%p1210_p7)
}
  0x37   : > { %s1286_s13 = smov 128   ;;  %s1287_s15 = smov 8  }
  0x38   : > { %1088 = dma.hbm_to_vmem [thread:$0]  (!%p1397_p13), %s1391_s18, 2048, %s1386_s14, %s1402_s26, %s1286_s13, %s1286_s13, %s1287_s15  }
  0x39   : > { %p125_p2 = scmp.lt.s32.totalorder %s1282_s0, 5  ;;  %p2268_p4 = scmp.ge.s32.totalorder %s1282_s0, 1 }
  0x3b   : > { %p126_p8 = pnand %p2268_p4, %p125_p2 }
  0x3c   : > { %s131_s16 = sand.u32 (!%p126_p8), 1, %s1258_s20  }
  0x3d   : > { %129 = sbr.rel (%p126_p8) target bundleno = 277 (0x115), region = 24  ;;  %s1072_s17 = sshll.u32 (!%p126_p8), %s131_s16, 7 }
  0x3e   : > { %s132_s29 = scalar_lea.sflag (!%p126_p8), [#allocation6], %s131_s16  ;;  %s1434_s30 = scalar_lea.vmem (!%p126_p8), [#allocation5], %s1072_s17 }
  0x44   : > { %1249 = dma.done.wait (%p1373_p10), %s132_s29, 2048  }
  0x45   : > { %1251 = vsyncadd (%p1373_p10), %s132_s29, 4294965248  ;;  %p155_p0 = scmp.lt.s32.totalorder %s1270_s23, 1  ;;  %p1075_p13 = scmp.ne.s32.totalorder %s1266_s22, 0 }
  0x46   : > { %v1288_v0 = vmov (!%p1075_p13), -inf  }
  0x47   : > { %s156_s14 = scalar_select %p155_p0, %s1270_s23, 1 }
  0x48   : > { %163 = sbr.rel (%p1075_p13) target bundleno = 79 (0x4f), region = 32  ;;  %164 = vst [vmem:[#allocation2] sm:$0xff] (!%p1075_p13), %v1288_v0  ;;  %165 = vst [vmem:[#allocation2 + $0x8] sm:$0xff] (!%p1075_p13), %v1288_v0 }
  0x49   : > { %s1082_s18 = sshll.u32 %s156_s14, 4 }
  0x4a   : > { %s1445_s3 = scalar_lea.vmem %s2261_s2, %s1082_s18 }
  0x4f PF: > { %v182_v1 = vlaneseq  ;;  %s1449_s4 = sshll.u32 %s1270_s23, 7  ;;  %s1076_s23 = sshll.u32 %s1266_s22, 3  ;;  %v1466_v4 = vld [vmem:[%s1434_s30] sm:$0xff]  ;;  %v1469_v5 = vld [vmem:[%s1434_s30 + $0x10] sm:$0xff]  ;;  %v1472_v6 = vld [vmem:[%s1434_s30 + $0x8] sm:$0xff]  ;;  %vm2263_vm6 = vcmask 1041409  }
  0x50   : > { %s189_s5 = sadd.s32 4, %s1449_s4  ;;  %s191_s6 = sadd.s32 6, %s1449_s4  ;;  %v1475_v7 = vld [vmem:[%s1434_s30 + $0x18] sm:$0xff]  ;;  %v1478_v8 = vld [vmem:[%s1434_s30 + $0x20] sm:$0xff]  ;;  %v1481_v9 = vld [vmem:[%s1434_s30 + $0x28] sm:$0xff]  ;;  %v186_v11 = vstv %s1076_s23  ;;  %vm2262_vm7 = vcmask 1042434  }
  0x51   : > { %v1453_v2 = vshrl.u32 %v182_v1, 7  ;;  %s190_s8 = sld [smem:[#allocation4 + %s189_s5]]  ;;  %s358_s11 = sadd.s32 2, %s1449_s4  ;;  %v1484_v10 = vld [vmem:[%s1434_s30 + $0x30] sm:$0xff]  ;;  %v1487_v12 = vld [vmem:[%s1434_s30 + $0x38] sm:$0xff]  ;;  %v1490_v13 = vld [vmem:[%s1434_s30 + $0x40] sm:$0xff] }
  0x52   : > { %s192_s7 = sld [smem:[#allocation4 + %s191_s6]]  ;;  %v1493_v16 = vld [vmem:[%s1434_s30 + $0x48] sm:$0xff]  ;;  %v1496_v17 = vld [vmem:[%s1434_s30 + $0x50] sm:$0xff]  ;;  %v1499_v18 = vld [vmem:[%s1434_s30 + $0x58] sm:$0xff]  ;;  %s273_s13 = sadd.s32 5, %s1449_s4  ;;  %vm2264_vm8 = vcmask 1043459  }
  0x53   : > { %s1456_s9 = sld [smem:[#allocation4 + %s1449_s4]]  ;;  %v1463_v3 = vadd.s32 8, %v1453_v2  ;;  %v1506_v19 = vld [vmem:[%s1434_s30 + $0x60] sm:$0xff]  ;;  %v1509_v20 = vld [vmem:[%s1434_s30 + $0x68] sm:$0xff]  ;;  %v1512_v21 = vadd.s32 %v186_v11, %v1453_v2  ;;  %v1521_v25 = vld [vmem:[%s1434_s30 + $0x70] sm:$0xff]  ;;  %s275_s15 = sadd.s32 7, %s1449_s4 }
  0x54   : > { %s1460_s12 = sld [smem:[#allocation4 + %s358_s11]]  ;;  %v1524_v26 = vld [vmem:[%s1434_s30 + $0x78] sm:$0xff]  ;;  %s424_s17 = sadd.s32 1, %s1449_s4  ;;  %vm379_vm9 = vcmask 1044484   ;;  %vm381_vm10 = vcmask 1045509   ;;  %vm383_vm11 = vcmask 1046534  }
  0x55   : > { %s1580_s16 = sld [smem:[#allocation4 + %s273_s13]]  ;;  %s426_s29 = sadd.s32 3, %s1449_s4  ;;  %vm385_vm12 = vcmask 1047559  }
  0x56   : > { %s453_s14 = sadd.s32 12, %s1449_s4  ;;  %s1585_s18 = sld [smem:[#allocation4 + %s275_s15]] }
  0x57   : > { %v193_v14 = vstv %s190_s8  ;;  %s1587_s19 = sld [smem:[#allocation4 + %s424_s17]]  ;;  %s455_s6 = sadd.s32 14, %s1449_s4 }
  0x58   : > { %v196_v15 = vstv %s192_s7  ;;  %vm194_vm0 = vcmp.ge.s32.totalorder %v1453_v2, %v193_v14  ;;  %vm195_vm1 = vcmp.ge.s32.totalorder %v1463_v3, %v193_v14  ;;  %s1589_s26 = sld [smem:[#allocation4 + %s426_s29]]  ;;  %s621_s8 = sadd.s32 8, %s1449_s4 }
  0x59   : > { %vm197_vm2 = vcmp.lt.s32.totalorder %v1453_v2, %v196_v15  ;;  %vm198_vm3 = vcmp.lt.s32.totalorder %v1463_v3, %v196_v15  ;;  %v360_v23 = vstv %s1456_s9  ;;  %s1591_s5 = sld [smem:[#allocation4 + %s453_s14]]  ;;  %s623_s11 = sadd.s32 10, %s1449_s4 }
  0x5a   : > { %vm1514_vm4 = vmand %vm194_vm0, %vm197_vm2  ;;  %v362_v24 = vstv %s1460_s12  ;;  %vm1596_vm13 = vcmp.ge.s32.totalorder %v1512_v21, %v360_v23  ;;  %s1698_s7 = sld [smem:[#allocation4 + %s455_s6]]  ;;  %s537_s23 = sadd.s32 13, %s1449_s4 }
  0x5b   : > { %vm1526_vm5 = vmand %vm195_vm1, %vm198_vm3  ;;  %v201_v28 = vsel %vm1514_vm4, %v1466_v4, -inf  ;;  %v203_v29 = vsel %vm1514_vm4, %v1469_v5, -inf  ;;  %v205_v30 = vsel %vm1514_vm4, %v1478_v8, -inf  ;;  %v207_v31 = vsel %vm1514_vm4, %v1484_v10, -inf  ;;  %s1700_s9 = sld [smem:[#allocation4 + %s621_s8]]  ;;  %s539_s13 = sadd.s32 15, %s1449_s4 }
  0x5c   : > { %v202_v32 = vsel %vm1526_vm5, %v1472_v6, -inf  ;;  %v204_v33 = vsel %vm1526_vm5, %v1475_v7, -inf  ;;  %v206_v34 = vsel %vm1526_vm5, %v1481_v9, -inf  ;;  %v208_v35 = vsel %vm1526_vm5, %v1487_v12, -inf  ;;  %s1808_s12 = sld [smem:[#allocation4 + %s623_s11]]  ;;  %s684_s17 = sadd.s32 11, %s1449_s4 }
  0x5d   : > { %v209_v36 = vsel %vm1514_vm4, %v1490_v13, -inf  ;;  %v210_v37 = vsel %vm1526_vm5, %v1493_v16, -inf  ;;  %v211_v38 = vsel %vm1514_vm4, %v1496_v17, -inf  ;;  %v212_v39 = vsel %vm1526_vm5, %v1499_v18, -inf  ;;  %s1811_s15 = sld [smem:[#allocation4 + %s537_s23]]  ;;  %s711_s29 = sadd.s32 20, %s1449_s4 }
  0x5e   : > { %v213_v40 = vsel %vm1514_vm4, %v1506_v19, -inf  ;;  %v214_v41 = vsel %vm1526_vm5, %v1509_v20, -inf  ;;  %v215_v42 = vsel %vm1514_vm4, %v1521_v25, -inf  ;;  %v216_v43 = vsel %vm1526_vm5, %v1524_v26, -inf  ;;  %s1816_s14 = sld [smem:[#allocation4 + %s539_s13]]  ;;  %s879_s6 = sadd.s32 16, %s1449_s4 }
  0x5f   : > { %v217_v44 = vmax.f32 %v201_v28, %v202_v32  ;;  %v224_v45 = vmax.f32 %v203_v29, %v204_v33  ;;  %v231_v46 = vmax.f32 %v205_v30, %v206_v34  ;;  %v238_v47 = vmax.f32 %v207_v31, %v208_v35  ;;  %s795_s11 = sadd.s32 21, %s1449_s4  ;;  %s797_s23 = sadd.s32 23, %s1449_s4 }
  0x60   : > { %v245_v48 = vmax.f32 %v209_v36, %v210_v37  ;;  %v252_v49 = vmax.f32 %v211_v38, %v212_v39  ;;  %v259_v50 = vmax.f32 %v213_v40, %v214_v41  ;;  %v266_v51 = vmax.f32 %v215_v42, %v216_v43  ;;  %s2065_s13 = sld [smem:[#allocation4 + %s795_s11]]  ;;  %p1078_p10 = scmp.ne.s32.totalorder %s1266_s22, 1 }
  0x61   : > { %v218_v52 = vrot.slane %v217_v44, 4  ;;  %v225_v53 = vrot.slane %v224_v45, 4  ;;  %v232_v54 = vrot.slane %v231_v46, 4  ;;  %v239_v55 = vrot.slane %v238_v47, 4 }
  0x62   : > { %v246_v56 = vrot.slane %v245_v48, 4  ;;  %v253_v57 = vrot.slane %v252_v49, 4  ;;  %v260_v58 = vrot.slane %v259_v50, 4  ;;  %v267_v59 = vrot.slane %v266_v51, 4 }
  0x63   : > { %v219_v60 = vmax.f32 %v217_v44, %v218_v52  ;;  %v226_v61 = vmax.f32 %v224_v45, %v225_v53  ;;  %v233_v62 = vmax.f32 %v231_v46, %v232_v54  ;;  %v240_v63 = vmax.f32 %v238_v47, %v239_v55 }
  0x64   : > { %v247_v0 = vmax.f32 %v245_v48, %v246_v56  ;;  %v254_v1 = vmax.f32 %v252_v49, %v253_v57  ;;  %v261_v11 = vmax.f32 %v259_v50, %v260_v58  ;;  %v268_v14 = vmax.f32 %v266_v51, %v267_v59 }
  0x65   : > { %v220_v15 = vrot.slane %v219_v60, 2  ;;  %v227_v22 = vrot.slane %v226_v61, 2  ;;  %v234_v27 = vrot.slane %v233_v62, 2  ;;  %v241_v28 = vrot.slane %v240_v63, 2 }
  0x66   : > { %v248_v29 = vrot.slane %v247_v0, 2  ;;  %v255_v30 = vrot.slane %v254_v1, 2  ;;  %v262_v31 = vrot.slane %v261_v11, 2  ;;  %v269_v32 = vrot.slane %v268_v14, 2 }
  0x67   : > { %v221_v33 = vmax.f32 %v219_v60, %v220_v15  ;;  %v228_v34 = vmax.f32 %v226_v61, %v227_v22  ;;  %v235_v35 = vmax.f32 %v233_v62, %v234_v27  ;;  %v242_v36 = vmax.f32 %v240_v63, %v241_v28 }
  0x68   : > { %v249_v37 = vmax.f32 %v247_v0, %v248_v29  ;;  %v256_v38 = vmax.f32 %v254_v1, %v255_v30  ;;  %v263_v39 = vmax.f32 %v261_v11, %v262_v31  ;;  %v270_v40 = vmax.f32 %v268_v14, %v269_v32 }
  0x69   : > { %v222_v41 = vrot.slane %v221_v33, 1  ;;  %v229_v42 = vrot.slane %v228_v34, 1  ;;  %v236_v43 = vrot.slane %v235_v35, 1  ;;  %v243_v44 = vrot.slane %v242_v36, 1 }
  0x6a   : > { %v250_v45 = vrot.slane %v249_v37, 1  ;;  %v257_v46 = vrot.slane %v256_v38, 1  ;;  %v264_v47 = vrot.slane %v263_v39, 1  ;;  %v271_v48 = vrot.slane %v270_v40, 1 }
  0x6b   : > { %v223_v49 = vmax.f32 %v221_v33, %v222_v41  ;;  %v230_v50 = vmax.f32 %v228_v34, %v229_v42  ;;  %v237_v51 = vmax.f32 %v235_v35, %v236_v43  ;;  %v244_v52 = vmax.f32 %v242_v36, %v243_v44 }
  0x6c   : > { %v251_v53 = vmax.f32 %v249_v37, %v250_v45  ;;  %v258_v54 = vmax.f32 %v256_v38, %v257_v46  ;;  %v265_v55 = vmax.f32 %v263_v39, %v264_v47  ;;  %vm1603_vm14 = vcmp.lt.s32.totalorder %v1512_v21, %v362_v24 }
  0x6d   : > { %v374_v58 = vsel %vm2263_vm6, %v230_v50, %v223_v49  ;;  %v277_v59 = vstv %s1580_s16  ;;  %v280_v23 = vstv %s1585_s18  ;;  %v272_v61 = vmax.f32 %v270_v40, %v271_v48  ;;  %vm364_vm1 = vmand %vm1596_vm13, %vm1603_vm14  ;;  %s682_s16 = sadd.s32 9, %s1449_s4 }
  0x6e   : > { %v376_v60 = vsel %vm2262_vm7, %v237_v51, %v374_v58  ;;  %vm278_vm15 = vcmp.ge.s32.totalorder %v1453_v2, %v277_v59  ;;  %vm279_vm0 = vcmp.ge.s32.totalorder %v1463_v3, %v277_v59  ;;  %vm281_vm2 = vcmp.lt.s32.totalorder %v1453_v2, %v280_v23  ;;  %s1818_s18 = sld [smem:[#allocation4 + %s682_s16]]  ;;  %s940_s16 = sadd.s32 17, %s1449_s4 }
  0x6f   : > { %v378_v24 = vsel %vm2264_vm8, %v244_v52, %v376_v60  ;;  %vm282_vm3 = vcmp.lt.s32.totalorder %v1463_v3, %v280_v23  ;;  %vm1621_vm4 = vmand %vm278_vm15, %vm281_vm2  ;;  %v428_v0 = vstv %s1587_s19  ;;  %v430_v1 = vstv %s1589_s26  ;;  %s1820_s19 = sld [smem:[#allocation4 + %s684_s17]] }
  0x70   : > { %v380_v62 = vsel %vm379_vm9, %v251_v53, %v378_v24  ;;  %v457_v11 = vstv %s1591_s5  ;;  %vm1629_vm5 = vmand %vm279_vm0, %vm282_vm3  ;;  %v285_v22 = vsel %vm1621_vm4, %v1466_v4, -inf  ;;  %v287_v27 = vsel %vm1621_vm4, %v1469_v5, -inf  ;;  %s1822_s26 = sld [smem:[#allocation4 + %s711_s29]]  ;;  %s713_s5 = sadd.s32 22, %s1449_s4 }
  0x71   : > { %v382_v14 = vsel %vm381_vm10, %v258_v54, %v380_v62  ;;  %v289_v28 = vsel %vm1621_vm4, %v1478_v8, -inf  ;;  %v286_v30 = vsel %vm1629_vm5, %v1472_v6, -inf  ;;  %v288_v31 = vsel %vm1629_vm5, %v1475_v7, -inf  ;;  %s1939_s8 = sld [smem:[#allocation4 + %s713_s5]]  ;;  %s942_s29 = sadd.s32 19, %s1449_s4 }
  0x72   : > { %v384_v29 = vsel %vm383_vm11, %v265_v55, %v382_v14  ;;  %v290_v32 = vsel %vm1629_vm5, %v1481_v9, -inf  ;;  %v291_v34 = vsel %vm1621_vm4, %v1484_v10, -inf  ;;  %v292_v35 = vsel %vm1629_vm5, %v1487_v12, -inf  ;;  %s2070_s17 = sld [smem:[#allocation4 + %s940_s16]] }
  0x73   : > { %v1653_v33 = vsel %vm385_vm12, %v272_v61, %v384_v29  ;;  %v293_v36 = vsel %vm1621_vm4, %v1490_v13, -inf  ;;  %v294_v38 = vsel %vm1629_vm5, %v1493_v16, -inf  ;;  %v295_v39 = vsel %vm1621_vm4, %v1496_v17, -inf }
  0x74   : > { %v388_v37 = vsel %vm364_vm1, %v1653_v33, -inf  ;;  %v296_v40 = vsel %vm1629_vm5, %v1499_v18, -inf  ;;  %v297_v42 = vsel %vm1621_vm4, %v1506_v19, -inf  ;;  %v298_v43 = vsel %vm1629_vm5, %v1509_v20, -inf }
  0x75   : > { %v389_v41 = vrot.slane %v388_v37, 4  ;;  %v299_v44 = vsel %vm1621_vm4, %v1521_v25, -inf  ;;  %v300_v45 = vsel %vm1629_vm5, %v1524_v26, -inf  ;;  %v301_v46 = vmax.f32 %v285_v22, %v286_v30 }
  0x76   : > { %v308_v47 = vmax.f32 %v287_v27, %v288_v31  ;;  %v315_v48 = vmax.f32 %v289_v28, %v290_v32  ;;  %v322_v50 = vmax.f32 %v291_v34, %v292_v35  ;;  %v329_v51 = vmax.f32 %v293_v36, %v294_v38 }
  0x77   : > { %v390_v49 = vmax.f32 %v388_v37, %v389_v41  ;;  %v336_v52 = vmax.f32 %v295_v39, %v296_v40  ;;  %v302_v53 = vrot.slane %v301_v46, 4  ;;  %v343_v58 = vmax.f32 %v297_v42, %v298_v43 }
  0x78   : > { %v309_v54 = vrot.slane %v308_v47, 4  ;;  %v316_v55 = vrot.slane %v315_v48, 4  ;;  %v323_v60 = vrot.slane %v322_v50, 4  ;;  %v330_v23 = vrot.slane %v329_v51, 4 }
  0x79   : > { %v391_v59 = vrot.slane %v390_v49, 2  ;;  %v337_v61 = vrot.slane %v336_v52, 4  ;;  %v303_v24 = vmax.f32 %v301_v46, %v302_v53  ;;  %v344_v15 = vrot.slane %v343_v58, 4 }
  0x7a   : > { %v310_v62 = vmax.f32 %v308_v47, %v309_v54  ;;  %v317_v14 = vmax.f32 %v315_v48, %v316_v55  ;;  %vm1692_vm15 = vcmp.ge.s32.totalorder %v1512_v21, %v428_v0  ;;  %v324_v28 = vmax.f32 %v322_v50, %v323_v60  ;;  %v395_v0 = vld [vmem:[#allocation2] sm:$0x1] }
  0x7b   : > { %v392_v27 = vmax.f32 %v390_v49, %v391_v59  ;;  %v331_v29 = vmax.f32 %v329_v51, %v330_v23  ;;  %v338_v30 = vmax.f32 %v336_v52, %v337_v61  ;;  %v304_v31 = vrot.slane %v303_v24, 2 }
  0x7c   : > { %v311_v32 = vrot.slane %v310_v62, 2  ;;  %v318_v34 = vrot.slane %v317_v14, 2  ;;  %v345_v35 = vmax.f32 %v343_v58, %v344_v15  ;;  %v325_v37 = vrot.slane %v324_v28, 2 }
  0x7d   : > { %v393_v36 = vrot.slane %v392_v27, 1  ;;  %v332_v38 = vrot.slane %v331_v29, 2  ;;  %v339_v39 = vrot.slane %v338_v30, 2  ;;  %v305_v40 = vmax.f32 %v303_v24, %v304_v31 }
  0x7e   : > { %v312_v41 = vmax.f32 %v310_v62, %v311_v32  ;;  %v319_v42 = vmax.f32 %v317_v14, %v318_v34  ;;  %v346_v43 = vrot.slane %v345_v35, 2  ;;  %v326_v47 = vmax.f32 %v324_v28, %v325_v37 }
  0x7f   : > { %v394_v46 = vmax.f32 %v392_v27, %v393_v36  ;;  %v333_v48 = vmax.f32 %v331_v29, %v332_v38  ;;  %v340_v49 = vmax.f32 %v338_v30, %v339_v39  ;;  %v306_v50 = vrot.slane %v305_v40, 1 }
  0x80   : > { %v313_v51 = vrot.slane %v312_v41, 1  ;;  %v320_v52 = vrot.slane %v319_v42, 1  ;;  %v347_v53 = vmax.f32 %v345_v35, %v346_v43  ;;  %v327_v55 = vrot.slane %v326_v47, 1 }
  0x81   : > { %v396_v54 = vmax.f32 %v395_v0, %v394_v46  ;;  %v334_v58 = vrot.slane %v333_v48, 1  ;;  %v341_v59 = vrot.slane %v340_v49, 1  ;;  %v307_v60 = vmax.f32 %v305_v40, %v306_v50 }
  0x82   : > { %v314_v23 = vmax.f32 %v312_v41, %v313_v51  ;;  %v321_v61 = vmax.f32 %v319_v42, %v320_v52  ;;  %v348_v24 = vrot.slane %v347_v53, 1  ;;  %v328_v62 = vmax.f32 %v326_v47, %v327_v55 }
  0x83   : > { %397 = vst [vmem:[#allocation2] sm:$0x1] %v396_v54  ;;  %v335_v14 = vmax.f32 %v333_v48, %v334_v58  ;;  %v342_v15 = vmax.f32 %v340_v49, %v341_v59  ;;  %v350_v27 = vmax.f32 %v299_v44, %v300_v45  ;;  %vm1710_vm0 = vcmp.lt.s32.totalorder %v1512_v21, %v430_v1 }
  0x84   : > { %v349_v28 = vmax.f32 %v347_v53, %v348_v24  ;;  %v406_v29 = vsel %vm2263_vm6, %v314_v23, %v307_v60  ;;  %vm458_vm2 = vcmp.ge.s32.totalorder %v1453_v2, %v457_v11  ;;  %vm432_vm3 = vmand %vm1692_vm15, %vm1710_vm0  ;;  %vm459_vm4 = vcmp.ge.s32.totalorder %v1463_v3, %v457_v11 }
  0x85   : > { %v351_v31 = vrot.slane %v350_v27, 4  ;;  %v407_v32 = vsel %vm2262_vm7, %v321_v61, %v406_v29  ;;  %v460_v63 = vstv %s1698_s7  ;;  %v433_v44 = vsel %vm432_vm3, %v1653_v33, -inf  ;;  %s1941_s7 = sld [smem:[#allocation4 + %s879_s6]] }
  0x86   : > { %v408_v1 = vsel %vm2264_vm8, %v328_v62, %v407_v32  ;;  %vm461_vm5 = vcmp.lt.s32.totalorder %v1453_v2, %v460_v63  ;;  %vm462_vm7 = vcmp.lt.s32.totalorder %v1463_v3, %v460_v63  ;;  %v434_v35 = vrot.slane %v433_v44, 4  ;;  %v440_v63 = vld [vmem:[#allocation2 + $0x2] sm:$0x1] }
  0x87   : > { %v352_v45 = vmax.f32 %v350_v27, %v351_v31  ;;  %v409_v34 = vsel %vm379_vm9, %v335_v14, %v408_v1  ;;  %vm1736_vm6 = vmand %vm458_vm2, %vm461_vm5  ;;  %v625_v36 = vstv %s1700_s9  ;;  %v627_v38 = vstv %s1808_s12  ;;  %s881_s9 = sadd.s32 18, %s1449_s4 }
  0x88   : > { %v410_v37 = vsel %vm381_vm10, %v342_v15, %v409_v34  ;;  %vm1742_vm8 = vmand %vm459_vm4, %vm462_vm7  ;;  %v465_v33 = vsel %vm1736_vm6, %v1466_v4, -inf  ;;  %v467_v39 = vsel %vm1736_vm6, %v1469_v5, -inf  ;;  %v469_v0 = vsel %vm1736_vm6, %v1478_v8, -inf  ;;  %s2063_s12 = sld [smem:[#allocation4 + %s881_s9]] }
  0x89   : > { %v353_v40 = vrot.slane %v352_v45, 2  ;;  %v411_v41 = vsel %vm383_vm11, %v349_v28, %v410_v37  ;;  %v435_v42 = vmax.f32 %v433_v44, %v434_v35  ;;  %v466_v43 = vsel %vm1742_vm8, %v1472_v6, -inf }
  0x8a   : > { %v468_v46 = vsel %vm1742_vm8, %v1475_v7, -inf  ;;  %v470_v47 = vsel %vm1742_vm8, %v1481_v9, -inf  ;;  %v471_v48 = vsel %vm1736_vm6, %v1484_v10, -inf  ;;  %v472_v49 = vsel %vm1742_vm8, %v1487_v12, -inf }
  0x8b   : > { %v354_v50 = vmax.f32 %v352_v45, %v353_v40  ;;  %v436_v51 = vrot.slane %v435_v42, 2  ;;  %v473_v52 = vsel %vm1736_vm6, %v1490_v13, -inf  ;;  %v474_v53 = vsel %vm1742_vm8, %v1493_v16, -inf }
  0x8c   : > { %v475_v54 = vsel %vm1736_vm6, %v1496_v17, -inf  ;;  %v476_v55 = vsel %vm1742_vm8, %v1499_v18, -inf  ;;  %v477_v58 = vsel %vm1736_vm6, %v1506_v19, -inf  ;;  %v478_v59 = vsel %vm1742_vm8, %v1509_v20, -inf }
  0x8d   : > { %v355_v60 = vrot.slane %v354_v50, 1  ;;  %v437_v23 = vmax.f32 %v435_v42, %v436_v51  ;;  %v479_v61 = vsel %vm1736_vm6, %v1521_v25, -inf  ;;  %v480_v24 = vsel %vm1742_vm8, %v1524_v26, -inf }
  0x8e   : > { %v481_v62 = vmax.f32 %v465_v33, %v466_v43  ;;  %v488_v14 = vmax.f32 %v467_v39, %v468_v46  ;;  %v495_v15 = vmax.f32 %v469_v0, %v470_v47  ;;  %v502_v27 = vmax.f32 %v471_v48, %v472_v49 }
  0x8f   : > { %v356_v28 = vmax.f32 %v354_v50, %v355_v60  ;;  %v438_v29 = vrot.slane %v437_v23, 1  ;;  %v509_v31 = vmax.f32 %v473_v52, %v474_v53  ;;  %v516_v32 = vmax.f32 %v475_v54, %v476_v55 }
  0x90   : > { %v482_v1 = vrot.slane %v481_v62, 4  ;;  %v489_v44 = vrot.slane %v488_v14, 4  ;;  %v496_v45 = vrot.slane %v495_v15, 4  ;;  %v503_v34 = vrot.slane %v502_v27, 4 }
  0x91   : > { %v412_v35 = vsel %vm385_vm12, %v356_v28, %v411_v41  ;;  %v439_v37 = vmax.f32 %v437_v23, %v438_v29  ;;  %v510_v40 = vrot.slane %v509_v31, 4  ;;  %v517_v42 = vrot.slane %v516_v32, 4 }
  0x92   : > { %v414_v33 = vsel %vm364_vm1, %v412_v35, -inf  ;;  %v443_v39 = vsel %vm432_vm3, %v412_v35, -inf  ;;  %v483_v0 = vmax.f32 %v481_v62, %v482_v1  ;;  %v490_v43 = vmax.f32 %v488_v14, %v489_v44 }
  0x93   : > { %v415_v46 = vrot.slane %v414_v33, 4  ;;  %v441_v41 = vmax.f32 %v440_v63, %v439_v37  ;;  %v444_v47 = vrot.slane %v443_v39, 4  ;;  %v497_v48 = vmax.f32 %v495_v15, %v496_v45 }
  0x94   : > { %v484_v49 = vrot.slane %v483_v0, 2  ;;  %v491_v56 = vrot.slane %v490_v43, 2  ;;  %v504_v50 = vmax.f32 %v502_v27, %v503_v34  ;;  %v511_v57 = vmax.f32 %v509_v31, %v510_v40 }
  0x95   : > { %v416_v51 = vmax.f32 %v414_v33, %v415_v46  ;;  %442 = vst [vmem:[#allocation2 + $0x2] sm:$0x1] %v441_v41  ;;  %v445_v22 = vmax.f32 %v443_v39, %v444_v47  ;;  %v498_v30 = vrot.slane %v497_v48, 2  ;;  %v518_v52 = vmax.f32 %v516_v32, %v517_v42 }
  0x96   : > { %v485_v53 = vmax.f32 %v483_v0, %v484_v49  ;;  %v492_v54 = vmax.f32 %v490_v43, %v491_v56  ;;  %v505_v55 = vrot.slane %v504_v50, 2  ;;  %v512_v60 = vrot.slane %v511_v57, 2  ;;  %v421_v0 = vld [vmem:[#allocation2 + $0x1] sm:$0x1]  ;;  %v450_v43 = vld [vmem:[#allocation2 + $0x3] sm:$0x1] }
  0x97   : > { %v417_v23 = vrot.slane %v416_v51, 2  ;;  %v446_v62 = vrot.slane %v445_v22, 2  ;;  %v499_v14 = vmax.f32 %v497_v48, %v498_v30  ;;  %v519_v15 = vrot.slane %v518_v52, 2 }
  0x98   : > { %v486_v27 = vrot.slane %v485_v53, 1  ;;  %v493_v28 = vrot.slane %v492_v54, 1  ;;  %v506_v29 = vmax.f32 %v504_v50, %v505_v55  ;;  %v513_v31 = vmax.f32 %v511_v57, %v512_v60 }
  0x99   : > { %v418_v32 = vmax.f32 %v416_v51, %v417_v23  ;;  %v447_v63 = vmax.f32 %v445_v22, %v446_v62  ;;  %v500_v1 = vrot.slane %v499_v14, 1  ;;  %v520_v44 = vmax.f32 %v518_v52, %v519_v15 }
  0x9a   : > { %v487_v45 = vmax.f32 %v485_v53, %v486_v27  ;;  %v494_v34 = vmax.f32 %v492_v54, %v493_v28  ;;  %v507_v35 = vrot.slane %v506_v29, 1  ;;  %v514_v37 = vrot.slane %v513_v31, 1 }
  0x9b   : > { %v419_v40 = vrot.slane %v418_v32, 1  ;;  %v448_v42 = vrot.slane %v447_v63, 1  ;;  %v501_v33 = vmax.f32 %v499_v14, %v500_v1  ;;  %v521_v39 = vrot.slane %v520_v44, 1 }
  0x9c   : > { %v508_v46 = vmax.f32 %v506_v29, %v507_v35  ;;  %v523_v41 = vmax.f32 %v477_v58, %v478_v59  ;;  %v530_v47 = vmax.f32 %v479_v61, %v480_v24  ;;  %v515_v56 = vmax.f32 %v513_v31, %v514_v37 }
  0x9d   : > { %v420_v48 = vmax.f32 %v418_v32, %v419_v40  ;;  %v449_v49 = vmax.f32 %v447_v63, %v448_v42  ;;  %v522_v50 = vmax.f32 %v520_v44, %v521_v39  ;;  %vm1843_vm7 = vcmp.ge.s32.totalorder %v1512_v21, %v625_v36 }
  0x9e   : > { %v524_v57 = vrot.slane %v523_v41, 4  ;;  %v531_v51 = vrot.slane %v530_v47, 4  ;;  %vm2291_vm8 = vcmask 1041409   ;;  %vm1850_vm6 = vcmp.lt.s32.totalorder %v1512_v21, %v627_v38 }
  0x9f   : > { %v638_v11 = vsel %vm2291_vm8, %v494_v34, %v487_v45  ;;  %v422_v59 = vmax.f32 %v421_v0, %v420_v48  ;;  %v451_v22 = vmax.f32 %v450_v43, %v449_v49  ;;  %vm2294_vm13 = vcmask 1042434   ;;  %vm629_vm5 = vmand %vm1843_vm7, %vm1850_vm6 }
  0xa0   : > { %v639_v24 = vsel %vm2294_vm13, %v501_v33, %v638_v11  ;;  %v525_v30 = vmax.f32 %v523_v41, %v524_v57  ;;  %v532_v52 = vmax.f32 %v530_v47, %v531_v51  ;;  %vm2295_vm14 = vcmask 1043459  }
  0xa1   : > { %v640_v36 = vsel %vm2295_vm14, %v508_v46, %v639_v24  ;;  %v541_v53 = vstv %s1811_s15  ;;  %423 = vst [vmem:[#allocation2 + $0x1] sm:$0x1] %v422_v59  ;;  %452 = vst [vmem:[#allocation2 + $0x3] sm:$0x1] %v451_v22  ;;  %v544_v55 = vstv %s1816_s14  ;;  %v686_v15 = vstv %s1818_s18  ;;  %s2067_s15 = sld [smem:[#allocation4 + %s797_s23]] }
  0xa2   : > { %v641_v54 = vsel %vm379_vm9, %v515_v56, %v640_v36  ;;  %vm542_vm1 = vcmp.ge.s32.totalorder %v1453_v2, %v541_v53  ;;  %vm543_vm15 = vcmp.ge.s32.totalorder %v1463_v3, %v541_v53  ;;  %v526_v60 = vrot.slane %v525_v30, 2 }
  0xa3   : > { %v533_v23 = vrot.slane %v532_v52, 2  ;;  %v642_v62 = vsel %vm381_vm10, %v522_v50, %v641_v54  ;;  %vm545_vm0 = vcmp.lt.s32.totalorder %v1453_v2, %v544_v55  ;;  %vm546_vm2 = vcmp.lt.s32.totalorder %v1463_v3, %v544_v55 }
  0xa4   : > { %vm1864_vm3 = vmand %vm542_vm1, %vm545_vm0  ;;  %v688_v27 = vstv %s1820_s19  ;;  %v715_v28 = vstv %s1822_s26  ;;  %v527_v29 = vmax.f32 %v525_v30, %v526_v60  ;;  %vm1952_vm14 = vcmp.ge.s32.totalorder %v1512_v21, %v686_v15 }
  0xa5   : > { %v534_v31 = vmax.f32 %v532_v52, %v533_v23  ;;  %vm1871_vm4 = vmand %vm543_vm15, %vm546_vm2  ;;  %v549_v63 = vsel %vm1864_vm3, %v1466_v4, -inf  ;;  %v551_v1 = vsel %vm1864_vm3, %v1469_v5, -inf  ;;  %v553_v34 = vsel %vm1864_vm3, %v1478_v8, -inf }
  0xa6   : > { %v550_v44 = vsel %vm1871_vm4, %v1472_v6, -inf  ;;  %v552_v45 = vsel %vm1871_vm4, %v1475_v7, -inf  ;;  %v554_v35 = vsel %vm1871_vm4, %v1481_v9, -inf  ;;  %v528_v37 = vrot.slane %v527_v29, 1 }
  0xa7   : > { %v535_v40 = vrot.slane %v534_v31, 1  ;;  %v555_v42 = vsel %vm1864_vm3, %v1484_v10, -inf  ;;  %v556_v33 = vsel %vm1871_vm4, %v1487_v12, -inf  ;;  %v557_v39 = vsel %vm1864_vm3, %v1490_v13, -inf }
  0xa8   : > { %v558_v0 = vsel %vm1871_vm4, %v1493_v16, -inf  ;;  %v559_v43 = vsel %vm1864_vm3, %v1496_v17, -inf  ;;  %v560_v46 = vsel %vm1871_vm4, %v1499_v18, -inf  ;;  %v529_v41 = vmax.f32 %v527_v29, %v528_v37 }
  0xa9   : > { %v536_v47 = vmax.f32 %v534_v31, %v535_v40  ;;  %v561_v48 = vsel %vm1864_vm3, %v1506_v19, -inf  ;;  %v562_v49 = vsel %vm1871_vm4, %v1509_v20, -inf  ;;  %v563_v56 = vsel %vm1864_vm3, %v1521_v25, -inf }
  0xaa   : > { %v564_v50 = vsel %vm1871_vm4, %v1524_v26, -inf  ;;  %v565_v57 = vmax.f32 %v549_v63, %v550_v44  ;;  %v572_v51 = vmax.f32 %v551_v1, %v552_v45  ;;  %v643_v38 = vsel %vm383_vm11, %v529_v41, %v642_v62 }
  0xab   : > { %v579_v11 = vmax.f32 %v553_v34, %v554_v35  ;;  %v586_v59 = vmax.f32 %v555_v42, %v556_v33  ;;  %v593_v22 = vmax.f32 %v557_v39, %v558_v0  ;;  %v1929_v24 = vsel %vm385_vm12, %v536_v47, %v643_v38 }
  0xac   : > { %v566_v30 = vrot.slane %v565_v57, 4  ;;  %v573_v52 = vrot.slane %v572_v51, 4  ;;  %v600_v36 = vmax.f32 %v559_v43, %v560_v46  ;;  %v646_v53 = vsel %vm629_vm5, %v1929_v24, -inf }
  0xad   : > { %v580_v54 = vrot.slane %v579_v11, 4  ;;  %v587_v55 = vrot.slane %v586_v59, 4  ;;  %v594_v60 = vrot.slane %v593_v22, 4  ;;  %v647_v23 = vrot.slane %v646_v53, 4 }
  0xae   : > { %v567_v62 = vmax.f32 %v565_v57, %v566_v30  ;;  %v574_v29 = vmax.f32 %v572_v51, %v573_v52  ;;  %v601_v31 = vrot.slane %v600_v36, 4  ;;  %v607_v44 = vmax.f32 %v561_v48, %v562_v49 }
  0xaf   : > { %v581_v32 = vmax.f32 %v579_v11, %v580_v54  ;;  %v588_v63 = vmax.f32 %v586_v59, %v587_v55  ;;  %v595_v1 = vmax.f32 %v593_v22, %v594_v60  ;;  %v648_v45 = vmax.f32 %v646_v53, %v647_v23  ;;  %v653_v23 = vld [vmem:[#allocation2 + $0x4] sm:$0x1] }
  0xb0   : > { %v568_v34 = vrot.slane %v567_v62, 2  ;;  %v575_v35 = vrot.slane %v574_v29, 2  ;;  %v602_v37 = vmax.f32 %v600_v36, %v601_v31  ;;  %v608_v39 = vrot.slane %v607_v44, 4 }
  0xb1   : > { %v582_v40 = vrot.slane %v581_v32, 2  ;;  %v589_v42 = vrot.slane %v588_v63, 2  ;;  %v596_v33 = vrot.slane %v595_v1, 2  ;;  %v649_v0 = vrot.slane %v648_v45, 2 }
  0xb2   : > { %v569_v43 = vmax.f32 %v567_v62, %v568_v34  ;;  %v576_v46 = vmax.f32 %v574_v29, %v575_v35  ;;  %v603_v41 = vrot.slane %v602_v37, 2  ;;  %v609_v38 = vmax.f32 %v607_v44, %v608_v39 }
  0xb3   : > { %v583_v47 = vmax.f32 %v581_v32, %v582_v40  ;;  %v590_v57 = vmax.f32 %v588_v63, %v589_v42  ;;  %v597_v51 = vmax.f32 %v595_v1, %v596_v33  ;;  %v650_v48 = vmax.f32 %v648_v45, %v649_v0 }
  0xb4   : > { %v570_v49 = vrot.slane %v569_v43, 1  ;;  %v577_v11 = vrot.slane %v576_v46, 1  ;;  %v604_v59 = vmax.f32 %v602_v37, %v603_v41  ;;  %v610_v36 = vrot.slane %v609_v38, 2 }
  0xb5   : > { %v584_v22 = vrot.slane %v583_v47, 1  ;;  %v591_v30 = vrot.slane %v590_v57, 1  ;;  %v598_v52 = vrot.slane %v597_v51, 1  ;;  %v651_v53 = vrot.slane %v650_v48, 1 }
  0xb6   : > { %v571_v54 = vmax.f32 %v569_v43, %v570_v49  ;;  %v578_v55 = vmax.f32 %v576_v46, %v577_v11  ;;  %v605_v60 = vrot.slane %v604_v59, 1  ;;  %v611_v32 = vmax.f32 %v609_v38, %v610_v36 }
  0xb7   : > { %v585_v62 = vmax.f32 %v583_v47, %v584_v22  ;;  %v592_v29 = vmax.f32 %v590_v57, %v591_v30  ;;  %v599_v31 = vmax.f32 %v597_v51, %v598_v52  ;;  %v652_v63 = vmax.f32 %v650_v48, %v651_v53 }
  0xb8   : > { %v606_v1 = vmax.f32 %v604_v59, %v605_v60  ;;  %v614_v44 = vmax.f32 %v563_v56, %v564_v50  ;;  %v664_v45 = vsel %vm2291_vm8, %v578_v55, %v571_v54  ;;  %v612_v34 = vrot.slane %v611_v32, 1  ;;  %v698_v60 = vld [vmem:[#allocation2 + $0x6] sm:$0x1] }
  0xb9   : > { %v665_v35 = vsel %vm2294_vm13, %v585_v62, %v664_v45  ;;  %vm1959_vm1 = vcmp.lt.s32.totalorder %v1512_v21, %v688_v27  ;;  %v654_v14 = vmax.f32 %v653_v23, %v652_v63  ;;  %vm2304_vm15 = vcmask 1043459  }
  0xba   : > { %v615_v56 = vrot.slane %v614_v44, 4  ;;  %v666_v50 = vsel %vm2304_vm15, %v592_v29, %v665_v35  ;;  %vm690_vm0 = vmand %vm1952_vm14, %vm1959_vm1  ;;  %vm1971_vm2 = vcmp.ge.s32.totalorder %v1453_v2, %v715_v28  ;;  %v613_v27 = vmax.f32 %v611_v32, %v612_v34 }
  0xbb   : > { %v667_v42 = vsel %vm379_vm9, %v599_v31, %v666_v50  ;;  %v691_v33 = vsel %vm690_vm0, %v1929_v24, -inf  ;;  %vm717_vm3 = vcmp.ge.s32.totalorder %v1463_v3, %v715_v28  ;;  %655 = vst [vmem:[#allocation2 + $0x4] sm:$0x1] %v654_v14  ;;  %v718_v46 = vstv %s1939_s8 }
  0xbc   : > { %v616_v39 = vmax.f32 %v614_v44, %v615_v56  ;;  %v668_v0 = vsel %vm381_vm10, %v606_v1, %v667_v42  ;;  %v692_v43 = vrot.slane %v691_v33, 4  ;;  %vm719_vm4 = vcmp.lt.s32.totalorder %v1453_v2, %v718_v46 }
  0xbd   : > { %vm720_vm8 = vcmp.lt.s32.totalorder %v1463_v3, %v718_v46  ;;  %v669_v47 = vsel %vm383_vm11, %v613_v27, %v668_v0  ;;  %vm1992_vm13 = vmand %vm1971_vm2, %vm719_vm4  ;;  %v883_v28 = vstv %s1941_s7  ;;  %vm2311_vm7 = vcmask 1041409  }
  0xbe   : > { %v617_v41 = vrot.slane %v616_v39, 2  ;;  %v693_v57 = vmax.f32 %v691_v33, %v692_v43  ;;  %vm1997_vm15 = vmand %vm717_vm3, %vm720_vm8  ;;  %v723_v38 = vsel %vm1992_vm13, %v1466_v4, -inf  ;;  %v725_v48 = vsel %vm1992_vm13, %v1469_v5, -inf }
  0xbf   : > { %v727_v49 = vsel %vm1992_vm13, %v1478_v8, -inf  ;;  %v729_v11 = vsel %vm1992_vm13, %v1484_v10, -inf  ;;  %v724_v30 = vsel %vm1997_vm15, %v1472_v6, -inf  ;;  %v726_v4 = vsel %vm1997_vm15, %v1475_v7, -inf }
  0xc0   : > { %v618_v59 = vmax.f32 %v616_v39, %v617_v41  ;;  %v694_v22 = vrot.slane %v693_v57, 2  ;;  %v728_v5 = vsel %vm1997_vm15, %v1481_v9, -inf  ;;  %v730_v8 = vsel %vm1997_vm15, %v1487_v12, -inf }
  0xc1   : > { %v731_v10 = vsel %vm1992_vm13, %v1490_v13, -inf  ;;  %v732_v6 = vsel %vm1997_vm15, %v1493_v16, -inf  ;;  %v733_v7 = vsel %vm1992_vm13, %v1496_v17, -inf  ;;  %v734_v9 = vsel %vm1997_vm15, %v1499_v18, -inf }
  0xc2   : > { %v619_v52 = vrot.slane %v618_v59, 1  ;;  %v695_v36 = vmax.f32 %v693_v57, %v694_v22  ;;  %v735_v12 = vsel %vm1992_vm13, %v1506_v19, -inf  ;;  %v736_v13 = vsel %vm1997_vm15, %v1509_v20, -inf }
  0xc3   : > { %v737_v16 = vsel %vm1992_vm13, %v1521_v25, -inf  ;;  %v738_v17 = vsel %vm1997_vm15, %v1524_v26, -inf  ;;  %v739_v55 = vmax.f32 %v723_v38, %v724_v30  ;;  %v746_v18 = vmax.f32 %v725_v48, %v726_v4 }
  0xc4   : > { %v620_v53 = vmax.f32 %v618_v59, %v619_v52  ;;  %v696_v54 = vrot.slane %v695_v36, 1  ;;  %v753_v23 = vmax.f32 %v727_v49, %v728_v5  ;;  %v760_v62 = vmax.f32 %v729_v11, %v730_v8 }
  0xc5   : > { %v767_v29 = vmax.f32 %v731_v10, %v732_v6  ;;  %v774_v31 = vmax.f32 %v733_v7, %v734_v9  ;;  %v740_v1 = vrot.slane %v739_v55, 4  ;;  %v747_v44 = vrot.slane %v746_v18, 4 }
  0xc6   : > { %v670_v32 = vsel %vm385_vm12, %v620_v53, %v669_v47  ;;  %v697_v63 = vmax.f32 %v695_v36, %v696_v54  ;;  %v754_v35 = vrot.slane %v753_v23, 4  ;;  %v761_v14 = vrot.slane %v760_v62, 4 }
  0xc7   : > { %v672_v45 = vsel %vm629_vm5, %v670_v32, -inf  ;;  %v701_v34 = vsel %vm690_vm0, %v670_v32, -inf  ;;  %v741_v27 = vmax.f32 %v739_v55, %v740_v1  ;;  %v748_v42 = vmax.f32 %v746_v18, %v747_v44  ;;  %v679_v18 = vld [vmem:[#allocation2 + $0x5] sm:$0x1] }
  0xc8   : > { %v673_v56 = vrot.slane %v672_v45, 4  ;;  %v699_v50 = vmax.f32 %v698_v60, %v697_v63  ;;  %v702_v15 = vrot.slane %v701_v34, 4  ;;  %v755_v58 = vmax.f32 %v753_v23, %v754_v35  ;;  %v708_v60 = vld [vmem:[#allocation2 + $0x7] sm:$0x1] }
  0xc9   : > { %v762_v33 = vmax.f32 %v760_v62, %v761_v14  ;;  %v768_v61 = vrot.slane %v767_v29, 4  ;;  %v742_v0 = vrot.slane %v741_v27, 2  ;;  %v775_v40 = vrot.slane %v774_v31, 4 }
  0xca   : > { %v674_v39 = vmax.f32 %v672_v45, %v673_v56  ;;  %700 = vst [vmem:[#allocation2 + $0x6] sm:$0x1] %v699_v50  ;;  %v703_v37 = vmax.f32 %v701_v34, %v702_v15  ;;  %v749_v43 = vrot.slane %v748_v42, 2  ;;  %v756_v46 = vrot.slane %v755_v58, 2 }
  0xcb   : > { %v763_v41 = vrot.slane %v762_v33, 2  ;;  %v769_v47 = vmax.f32 %v767_v29, %v768_v61  ;;  %v743_v48 = vmax.f32 %v741_v27, %v742_v0  ;;  %v776_v49 = vmax.f32 %v774_v31, %v775_v40  ;;  %v1160_v40 = vld [vmem:[%s1434_s30 + $0x20] sm:$0xff] }
  0xcc   : > { %v675_v57 = vrot.slane %v674_v39, 2  ;;  %v704_v38 = vrot.slane %v703_v37, 2  ;;  %v750_v11 = vmax.f32 %v748_v42, %v749_v43  ;;  %v757_v59 = vmax.f32 %v755_v58, %v756_v46 }
  0xcd   : > { %v764_v22 = vmax.f32 %v762_v33, %v763_v41  ;;  %v770_v30 = vrot.slane %v769_v47, 2  ;;  %v744_v8 = vrot.slane %v743_v48, 1  ;;  %v777_v10 = vrot.slane %v776_v49, 2  ;;  %v1161_v41 = vld [vmem:[%s1434_s30 + $0x8] sm:$0xff] }
  0xce   : > { %v676_v4 = vmax.f32 %v674_v39, %v675_v57  ;;  %v705_v5 = vmax.f32 %v703_v37, %v704_v38  ;;  %v751_v6 = vrot.slane %v750_v11, 1  ;;  %v758_v52 = vrot.slane %v757_v59, 1  ;;  %v1159_v37 = vld [vmem:[%s1434_s30 + $0x10] sm:$0xff]  ;;  %v1162_v57 = vld [vmem:[%s1434_s30 + $0x18] sm:$0xff] }
  0xcf   : > { %v765_v36 = vrot.slane %v764_v22, 1  ;;  %v771_v7 = vmax.f32 %v769_v47, %v770_v30  ;;  %v745_v54 = vmax.f32 %v743_v48, %v744_v8  ;;  %v778_v55 = vmax.f32 %v776_v49, %v777_v10  ;;  %v1163_v48 = vld [vmem:[%s1434_s30 + $0x28] sm:$0xff]  ;;  %v1165_v30 = vld [vmem:[%s1434_s30 + $0x38] sm:$0xff] }
  0xd0   : > { %v677_v9 = vrot.slane %v676_v4, 1  ;;  %v706_v53 = vrot.slane %v705_v5, 1  ;;  %v752_v23 = vmax.f32 %v750_v11, %v751_v6  ;;  %v759_v62 = vmax.f32 %v757_v59, %v758_v52  ;;  %v1164_v59 = vld [vmem:[%s1434_s30 + $0x30] sm:$0xff]  ;;  %v1167_v6 = vld [vmem:[%s1434_s30 + $0x48] sm:$0xff] }
  0xd1   : > { %v766_v29 = vmax.f32 %v764_v22, %v765_v36  ;;  %v772_v31 = vrot.slane %v771_v7, 1  ;;  %v779_v1 = vrot.slane %v778_v55, 1  ;;  %v781_v44 = vmax.f32 %v735_v12, %v736_v13  ;;  %v1168_v36 = vld [vmem:[%s1434_s30 + $0x50] sm:$0xff] }
  0xd2   : > { %v678_v32 = vmax.f32 %v676_v4, %v677_v9  ;;  %v707_v63 = vmax.f32 %v705_v5, %v706_v53  ;;  %v788_v34 = vmax.f32 %v737_v16, %v738_v17  ;;  %v885_v35 = vstv %s2063_s12  ;;  %v1166_v5 = vld [vmem:[%s1434_s30 + $0x40] sm:$0xff]  ;;  %v1169_v9 = vld [vmem:[%s1434_s30 + $0x58] sm:$0xff] }
  0xd3   : > { %v773_v45 = vmax.f32 %v771_v7, %v772_v31  ;;  %v896_v14 = vsel %vm2311_vm7, %v752_v23, %v745_v54  ;;  %v780_v50 = vmax.f32 %v778_v55, %v779_v1  ;;  %v782_v15 = vrot.slane %v781_v44, 4  ;;  %v1170_v55 = vld [vmem:[%s1434_s30 + $0x60] sm:$0xff] }
  0xd4   : > { %v680_v56 = vmax.f32 %v679_v18, %v678_v32  ;;  %v709_v20 = vmax.f32 %v708_v60, %v707_v63  ;;  %vm2093_vm6 = vcmp.ge.s32.totalorder %v1512_v21, %v883_v28  ;;  %v789_v51 = vrot.slane %v788_v34, 4  ;;  %v1171_v60 = vld [vmem:[%s1434_s30 + $0x68] sm:$0xff]  ;;  %v2170_v32 = vld [vmem:[%s1434_s30 + $0x78] sm:$0xff] }
  0xd5   : > { %vm2314_vm5 = vcmask 1042434   ;;  %v799_v24 = vstv %s2065_s13  ;;  %v802_v25 = vstv %s2067_s15  ;;  %v783_v12 = vmax.f32 %v781_v44, %v782_v15 }
  0xd6   : > { %v897_v26 = vsel %vm2314_vm5, %v759_v62, %v896_v14  ;;  %681 = vst [vmem:[#allocation2 + $0x5] sm:$0x1] %v680_v56  ;;  %710 = vst [vmem:[#allocation2 + $0x7] sm:$0x1] %v709_v20  ;;  %vm2315_vm14 = vcmask 1043459   ;;  %vm800_vm1 = vcmp.ge.s32.totalorder %v1453_v2, %v799_v24  ;;  %vm801_vm0 = vcmp.ge.s32.totalorder %v1463_v3, %v799_v24  ;;  %v2164_v62 = vld [vmem:[%s1434_s30 + $0x70] sm:$0xff] }
  0xd7   : > { %v898_v13 = vsel %vm2315_vm14, %v766_v29, %v897_v26  ;;  %v790_v28 = vmax.f32 %v788_v34, %v789_v51  ;;  %vm803_vm2 = vcmp.lt.s32.totalorder %v1453_v2, %v802_v25  ;;  %vm804_vm3 = vcmp.lt.s32.totalorder %v1463_v3, %v802_v25  ;;  %v1158_v3 = vld [vmem:[%s1434_s30] sm:$0xff]  ;;  %s2187_s30 = sld [smem:[#allocation4 + %s942_s29]] }
  0xd8   : > { %v899_v16 = vsel %vm379_vm9, %v773_v45, %v898_v13  ;;  %v784_v17 = vrot.slane %v783_v12, 2  ;;  %vm2107_vm4 = vcmp.lt.s32.totalorder %v1512_v21, %v885_v35  ;;  %vm2112_vm8 = vmand %vm800_vm1, %vm803_vm2  ;;  %v944_v33 = vstv %s2070_s17 }
  0xd9   : > { %v900_v42 = vsel %vm381_vm10, %v780_v50, %v899_v16  ;;  %v791_v61 = vrot.slane %v790_v28, 2  ;;  %vm2117_vm13 = vmand %vm801_vm0, %vm804_vm3  ;;  %v807_v39 = vsel %vm2112_vm8, %v1158_v3, -inf  ;;  %v809_v0 = vsel %vm2112_vm8, %v1159_v37, -inf }
  0xda   : > { %v811_v43 = vsel %vm2112_vm8, %v1160_v40, -inf  ;;  %v785_v46 = vmax.f32 %v783_v12, %v784_v17  ;;  %v808_v47 = vsel %vm2117_vm13, %v1161_v41, -inf  ;;  %v810_v38 = vsel %vm2117_vm13, %v1162_v57, -inf  ;;  %vm887_vm15 = vmand %vm2093_vm6, %vm2107_vm4 }
  0xdb   : > { %v812_v49 = vsel %vm2117_vm13, %v1163_v48, -inf  ;;  %v792_v11 = vmax.f32 %v790_v28, %v791_v61  ;;  %v813_v22 = vsel %vm2112_vm8, %v1164_v59, -inf  ;;  %v814_v4 = vsel %vm2117_vm13, %v1165_v30, -inf }
  0xdc   : > { %v815_v8 = vsel %vm2112_vm8, %v1166_v5, -inf  ;;  %v786_v10 = vrot.slane %v785_v46, 1  ;;  %v816_v52 = vsel %vm2117_vm13, %v1167_v6, -inf  ;;  %v817_v7 = vsel %vm2112_vm8, %v1168_v36, -inf }
  0xdd   : > { %v818_v53 = vsel %vm2117_vm13, %v1169_v9, -inf  ;;  %v793_v54 = vrot.slane %v792_v11, 1  ;;  %v819_v18 = vsel %vm2112_vm8, %v1170_v55, -inf  ;;  %v820_v23 = vsel %vm2117_vm13, %v1171_v60, -inf }
  0xde   : > { %v821_v29 = vsel %vm2112_vm8, %v2164_v62, -inf  ;;  %v787_v31 = vmax.f32 %v785_v46, %v786_v10  ;;  %v822_v63 = vsel %vm2117_vm13, %v2170_v32, -inf  ;;  %v823_v1 = vmax.f32 %v807_v39, %v808_v47 }
  0xdf   : > { %v830_v44 = vmax.f32 %v809_v0, %v810_v38  ;;  %v794_v45 = vmax.f32 %v792_v11, %v793_v54  ;;  %v837_v34 = vmax.f32 %v811_v43, %v812_v49  ;;  %v844_v35 = vmax.f32 %v813_v22, %v814_v4 }
  0xe0   : > { %v851_v14 = vmax.f32 %v815_v8, %v816_v52  ;;  %v901_v56 = vsel %vm383_vm11, %v787_v31, %v900_v42  ;;  %v824_v20 = vrot.slane %v823_v1, 4  ;;  %v858_v15 = vmax.f32 %v817_v7, %v818_v53  ;;  %v911_v31 = vld [vmem:[#allocation2 + $0x8] sm:$0x1] }
  0xe1   : > { %v831_v50 = vrot.slane %v830_v44, 4  ;;  %v902_v51 = vsel %vm385_vm12, %v794_v45, %v901_v56  ;;  %v838_v26 = vrot.slane %v837_v34, 4  ;;  %v845_v24 = vrot.slane %v844_v35, 4 }
  0xe2   : > { %v852_v25 = vrot.slane %v851_v14, 4  ;;  %v904_v12 = vsel %vm887_vm15, %v902_v51, -inf  ;;  %v825_v13 = vmax.f32 %v823_v1, %v824_v20  ;;  %v859_v16 = vrot.slane %v858_v15, 4 }
  0xe3   : > { %v832_v28 = vmax.f32 %v830_v44, %v831_v50  ;;  %v905_v17 = vrot.slane %v904_v12, 4  ;;  %v839_v42 = vmax.f32 %v837_v34, %v838_v26  ;;  %v846_v61 = vmax.f32 %v844_v35, %v845_v24 }
  0xe4   : > { %v853_v2 = vmax.f32 %v851_v14, %v852_v25  ;;  %v826_v3 = vrot.slane %v825_v13, 2  ;;  %v860_v37 = vmax.f32 %v858_v15, %v859_v16  ;;  %v865_v0 = vmax.f32 %v819_v18, %v820_v23 }
  0xe5   : > { %v833_v39 = vrot.slane %v832_v28, 2  ;;  %v906_v40 = vmax.f32 %v904_v12, %v905_v17  ;;  %v840_v43 = vrot.slane %v839_v42, 2  ;;  %v847_v46 = vrot.slane %v846_v61, 2 }
  0xe6   : > { %v854_v41 = vrot.slane %v853_v2, 2  ;;  %v827_v47 = vmax.f32 %v825_v13, %v826_v3  ;;  %v861_v38 = vrot.slane %v860_v37, 2  ;;  %v866_v48 = vrot.slane %v865_v0, 4 }
  0xe7   : > { %v834_v57 = vmax.f32 %v832_v28, %v833_v39  ;;  %v907_v49 = vrot.slane %v906_v40, 2  ;;  %v841_v11 = vmax.f32 %v839_v42, %v840_v43  ;;  %v848_v59 = vmax.f32 %v846_v61, %v847_v46 }
  0xe8   : > { %v855_v22 = vmax.f32 %v853_v2, %v854_v41  ;;  %v828_v30 = vrot.slane %v827_v47, 1  ;;  %v862_v5 = vmax.f32 %v860_v37, %v861_v38  ;;  %v867_v8 = vmax.f32 %v865_v0, %v866_v48 }
  0xe9   : > { %v835_v4 = vrot.slane %v834_v57, 1  ;;  %v908_v10 = vmax.f32 %v906_v40, %v907_v49  ;;  %v842_v6 = vrot.slane %v841_v11, 1  ;;  %v849_v52 = vrot.slane %v848_v59, 1 }
  0xea   : > { %v856_v36 = vrot.slane %v855_v22, 1  ;;  %v829_v7 = vmax.f32 %v827_v47, %v828_v30  ;;  %v868_v53 = vrot.slane %v867_v8, 2  ;;  %v946_v54 = vstv %s2187_s30 }
  0xeb   : > { %v836_v9 = vmax.f32 %v834_v57, %v835_v4  ;;  %v909_v55 = vrot.slane %v908_v10, 1  ;;  %v843_v18 = vmax.f32 %v841_v11, %v842_v6  ;;  %v850_v60 = vmax.f32 %v848_v59, %v849_v52  ;;  %v937_v11 = vld [vmem:[#allocation2 + $0x9] sm:$0x1]  ;;  %v966_v59 = vld [vmem:[#allocation2 + $0xb] sm:$0x1] }
  0xec   : > { %v863_v23 = vrot.slane %v862_v5, 1  ;;  %v857_v32 = vmax.f32 %v855_v22, %v856_v36  ;;  %v869_v1 = vmax.f32 %v867_v8, %v868_v53  ;;  %v872_v44 = vmax.f32 %v821_v29, %v822_v63  ;;  %v973_v8 = vld [vmem:[#allocation2] sm:$0xff] (!%p1078_p10) }
  0xed   : > { %v922_v45 = vsel %vm2311_vm7, %v836_v9, %v829_v7  ;;  %v910_v34 = vmax.f32 %v908_v10, %v909_v55  ;;  %vm2199_vm14 = vcmp.ge.s32.totalorder %v1512_v21, %v944_v33  ;;  %vm2204_vm1 = vcmp.lt.s32.totalorder %v1512_v21, %v946_v54 }
  0xee   : > { %v923_v35 = vsel %vm2314_vm5, %v843_v18, %v922_v45  ;;  %v873_v58 = vrot.slane %v872_v44, 4  ;;  %vm2326_vm0 = vcmask 1043459   ;;  %vm948_vm2 = vmand %vm2199_vm14, %vm2204_vm1  ;;  %v870_v63 = vrot.slane %v869_v1, 1 }
  0xef   : > { %v924_v62 = vsel %vm2326_vm0, %v850_v60, %v923_v35  ;;  %v912_v29 = vmax.f32 %v911_v31, %v910_v34  ;;  %v949_v33 = vsel %vm948_vm2, %v902_v51, -inf  ;;  %v864_v21 = vmax.f32 %v862_v5, %v863_v23  ;;  %v956_v51 = vld [vmem:[#allocation2 + $0xa] sm:$0x1] }
  0xf0   : > { %v874_v20 = vmax.f32 %v872_v44, %v873_v58  ;;  %v950_v50 = vrot.slane %v949_v33, 4  ;;  %v925_v15 = vsel %vm379_vm9, %v857_v32, %v924_v62  ;;  %v871_v25 = vmax.f32 %v869_v1, %v870_v63 }
  0xf1   : > { %913 = vst [vmem:[#allocation2 + $0x8] sm:$0x1] %v912_v29  ;;  %v926_v13 = vsel %vm381_vm10, %v864_v21, %v925_v15  ;;  %vm975_vm9 = vcmp.eq.f32.partialorder (!%p1078_p10), %v973_v8, -inf }
  0xf2   : > { %v875_v26 = vrot.slane %v874_v20, 2  ;;  %v951_v24 = vmax.f32 %v949_v33, %v950_v50  ;;  %v927_v42 = vsel %vm383_vm11, %v871_v25, %v926_v13  ;;  %v977_v6 = vsel (!%p1078_p10), %vm975_vm9, 0.0, %v973_v8 }
  0xf3   : > { %979 = vst [vmem:[%s1445_s3] sm:$0xff] (!%p1078_p10), %v977_v6 }
  0xf4   : > { %v876_v12 = vmax.f32 %v874_v20, %v875_v26  ;;  %v952_v28 = vrot.slane %v951_v24, 2 }
  0xf6   : > { %v877_v16 = vrot.slane %v876_v12, 1  ;;  %v953_v17 = vmax.f32 %v951_v24, %v952_v28 }
  0xf8   : > { %v878_v61 = vmax.f32 %v876_v12, %v877_v16  ;;  %v954_v2 = vrot.slane %v953_v17, 1 }
  0xfa   : > { %v928_v3 = vsel %vm385_vm12, %v878_v61, %v927_v42  ;;  %v955_v39 = vmax.f32 %v953_v17, %v954_v2 }
  0xfb   : > { %v930_v37 = vsel %vm887_vm15, %v928_v3, -inf  ;;  %v959_v0 = vsel %vm948_vm2, %v928_v3, -inf }
  0xfc   : > { %v931_v40 = vrot.slane %v930_v37, 4  ;;  %v957_v43 = vmax.f32 %v956_v51, %v955_v39  ;;  %v960_v46 = vrot.slane %v959_v0, 4 }
  0xfe   : > { %v932_v41 = vmax.f32 %v930_v37, %v931_v40  ;;  %958 = vst [vmem:[#allocation2 + $0xa] sm:$0x1] %v957_v43  ;;  %v961_v47 = vmax.f32 %v959_v0, %v960_v46 }
 0x100   : > { %v933_v57 = vrot.slane %v932_v41, 2  ;;  %v962_v38 = vrot.slane %v961_v47, 2 }
 0x102   : > { %v934_v48 = vmax.f32 %v932_v41, %v933_v57  ;;  %v963_v19 = vmax.f32 %v961_v47, %v962_v38 }
 0x104   : > { %v935_v49 = vrot.slane %v934_v48, 1  ;;  %v964_v27 = vrot.slane %v963_v19, 1  ;;  %972 = sbr.rel (%p1078_p10) target bundleno = 277 (0x115), region = 36 }
 0x106   : > { %v936_v22 = vmax.f32 %v934_v48, %v935_v49  ;;  %v965_v30 = vmax.f32 %v963_v19, %v964_v27 }
 0x108   : > { %v938_v4 = vmax.f32 %v937_v11, %v936_v22  ;;  %v967_v5 = vmax.f32 %v966_v59, %v965_v30 }
 0x10a   : > { %939 = vst [vmem:[#allocation2 + $0x9] sm:$0x1] %v938_v4  ;;  %968 = vst [vmem:[#allocation2 + $0xb] sm:$0x1] %v967_v5 }
 0x111   : > { %v974_v10 = vld [vmem:[#allocation2 + $0x8] sm:$0xf] }
 0x112   : > { %vm976_vm10 = vcmp.eq.f32.partialorder %v974_v10, -inf }
 0x113   : > { %v978_v52 = vsel %vm976_vm10, 0.0, %v974_v10 }
 0x114   : > { %980 = vst [vmem:[%s1445_s3 + $0x8] sm:$0xf] %v978_v52 }
 0x115 PF: > { %s19_s0 = sadd.s32 1, %s1282_s0   ;;  %s2327_s19 = smov %s1258_s20 }
 0x116   : > { %p16_p9 = scmp.ge.s32.totalorder %s19_s0, 6   ;;  %s2328_s20 = smov %s1262_s21 }
 0x117   : > { %s2329_s21 = smov %s1383_s10  ;;  %s2330_s22 = smov %s1274_s24 }
 0x118   : > { %s2331_s23 = smov %s1278_s25  ;;  %s2332_s24 = smov %s2335_s27 }
 0x119   : > { %s2333_s25 = smov %s2339_s28  ;;  %18 = sbr.rel (!%p16_p9) target bundleno = 17 (0x11), region = 72 }
 0x120   :  { %1002 = vsyncpa [#allocation6], 1 }
 0x121   :  { %1004 = vsyncpa [#allocation6 + $0x1], 1 }

</bundles_post_ra>
